<compile_context>
chip_gen: v7x
topology: tpu7x:2x2x1
jax: 0.10.0
libtpu: 0.0.40
codegen_flags: <defaults>
</compile_context>

<pallas_src>
import jax
import jax.numpy as jnp
from jax.experimental import pallas as pl
from jax.experimental.pallas import tpu as pltpu


def _gcn_kernel(a_ref, x_ref, w1_ref, b1_ref, w2_ref, b2_ref, w3_ref, b3_ref,
                out_ref):
    a = a_ref[...]                                            # bf16 (N, N)

    # ---- GCNConv 1: A_norm @ (X @ W1) + b1, then ReLU ----
    xw1 = jnp.dot(x_ref[...], w1_ref[...],
                  preferred_element_type=jnp.float32)
    h = jnp.dot(a, xw1.astype(jnp.bfloat16),
                preferred_element_type=jnp.float32) + b1_ref[...]
    h = jnp.maximum(h, 0.0)
    # dropout(p=0.4) -> identity in inference mode

    # ---- GCNConv 2: A_norm @ (H @ W2) + b2, then ReLU ----
    hw2 = jnp.dot(h.astype(jnp.bfloat16), w2_ref[...],
                  preferred_element_type=jnp.float32)
    h = jnp.dot(a, hw2.astype(jnp.bfloat16),
                preferred_element_type=jnp.float32) + b2_ref[...]
    h = jnp.maximum(h, 0.0)
    # dropout(p=0.4) -> identity in inference mode

    # ---- Linear head (lane-dense: C padded to 128) + log_softmax(dim=1) ----
    # Padded class columns carry a -1e30 bias (kept in f32), so exp() of them is
    # exactly 0 and they never win the max -> normalizer covers the real classes.
    logits = jnp.dot(h.astype(jnp.bfloat16), w3_ref[...],
                     preferred_element_type=jnp.float32) + b3_ref[...]
    shifted = logits - jnp.max(logits, axis=-1, keepdims=True)
    lse = jnp.log(jnp.sum(jnp.exp(shifted), axis=-1, keepdims=True))
    out_ref[...] = shifted - lse


def build_norm_adj(edge_index, num_nodes):
    """Dense D^-1/2 (A + I) D^-1/2 from an edge_index of shape (2, E). JAX glue.

    Duplicate edges scatter-ADD (matching torch_geometric's message passing).
    Compute this once per graph and pass the result into gcn_forward.
    """
    src = edge_index[0]
    dst = edge_index[1]
    a = jnp.zeros((num_nodes, num_nodes), jnp.float32)
    a = a.at[dst, src].add(1.0)                        # message flows src -> dst
    a = a + jnp.eye(num_nodes, dtype=jnp.float32)      # add self-loops
    deg = jnp.sum(a, axis=1)                           # degree incl. self-loop
    d_inv_sqrt = jax.lax.rsqrt(deg)
    return a * d_inv_sqrt[:, None] * d_inv_sqrt[None, :]


def _round_up(v, m):
    return ((v + m - 1) // m) * m


@jax.jit
def gcn_forward(x, a_norm, params):
    n_orig, f_orig = x.shape
    w1, b1, w2, b2, w3, b3 = params
    h_orig = w1.shape[1]
    c_orig = w3.shape[1]

    # ---- Padded, lane-dense shapes ----
    n = _round_up(n_orig, 128)         # 64   -> 128 (unmasked A tiles)
    f_pad = _round_up(f_orig, 128)     # 1433 -> 1536
    h_pad = _round_up(max(h_orig, 128), 128)   # 32 -> 128 (lane-dense hidden)
    c_pad = 128                        # lane-dense classifier output

    # ---- Zero-padding (wrapper-side layout plumbing; padded rows/cols are 0) ----
    a_pad = jnp.zeros((n, n), jnp.float32).at[:n_orig, :n_orig].set(a_norm)
    x_pad = jnp.zeros((n, f_pad), jnp.float32).at[:n_orig, :f_orig].set(x)
    w1_pad = jnp.zeros((f_pad, h_pad), jnp.float32).at[:f_orig, :h_orig].set(w1)
    b1_pad = jnp.zeros((1, h_pad), jnp.float32).at[:, :h_orig].set(b1)
    w2_pad = jnp.zeros((h_pad, h_pad), jnp.float32).at[:h_orig, :h_orig].set(w2)
    b2_pad = jnp.zeros((1, h_pad), jnp.float32).at[:, :h_orig].set(b2)
    w3_pad = jnp.zeros((h_pad, c_pad), jnp.float32).at[:h_orig, :c_orig].set(w3)
    b3_pad = jnp.full((1, c_pad), -1e30, jnp.float32).at[:, :c_orig].set(b3)

    # ---- bf16 MXU operands; biases stay f32 ----
    a_bf = a_pad.astype(jnp.bfloat16)
    x_bf = x_pad.astype(jnp.bfloat16)
    w1_bf = w1_pad.astype(jnp.bfloat16)
    w2_bf = w2_pad.astype(jnp.bfloat16)
    w3_bf = w3_pad.astype(jnp.bfloat16)

    cost = pl.CostEstimate(
        flops=int(2 * n * (f_pad * h_pad + 2 * n * h_pad
                           + h_pad * h_pad + h_pad * c_pad)),
        transcendentals=int(n * (c_pad + 1)),
        bytes_accessed=int(2 * (n * n + n * f_pad + f_pad * h_pad
                                + h_pad * h_pad + h_pad * c_pad)
                           + 4 * (2 * h_pad + c_pad)
                           + 4 * n * c_pad),
    )

    out = pl.pallas_call(
        _gcn_kernel,
        out_shape=jax.ShapeDtypeStruct((n, c_pad), jnp.float32),
        grid_spec=pltpu.PrefetchScalarGridSpec(
            num_scalar_prefetch=0,
            grid=(1,),                                        # single fused step
            in_specs=[
                pl.BlockSpec((n, n), lambda i: (0, 0)),          # A_norm
                pl.BlockSpec((n, f_pad), lambda i: (0, 0)),      # X (resident)
                pl.BlockSpec((f_pad, h_pad), lambda i: (0, 0)),  # W1 (resident)
                pl.BlockSpec((1, h_pad), lambda i: (0, 0)),      # b1
                pl.BlockSpec((h_pad, h_pad), lambda i: (0, 0)),  # W2
                pl.BlockSpec((1, h_pad), lambda i: (0, 0)),      # b2
                pl.BlockSpec((h_pad, c_pad), lambda i: (0, 0)),  # W3 (lane-padded)
                pl.BlockSpec((1, c_pad), lambda i: (0, 0)),      # b3 (lane-padded)
            ],
            out_specs=pl.BlockSpec((n, c_pad), lambda i: (0, 0)),
        ),
        compiler_params=pltpu.CompilerParams(
            dimension_semantics=("arbitrary",),
            vmem_limit_bytes=16 << 20,      # resident footprint ~1 MiB
        ),
        cost_estimate=cost,
    )(a_bf, x_bf, w1_bf, b1_pad, w2_bf, b2_pad, w3_bf, b3_pad)

    return out[:n_orig, :c_orig]


def gcn_reference(x, a_norm, params):
    """Pure-JAX reference with matching bf16-operand / f32-accumulate semantics."""
    w1, b1, w2, b2, w3, b3 = params

    def mm(p, q):
        return jnp.dot(p.astype(jnp.bfloat16), q.astype(jnp.bfloat16),
                       preferred_element_type=jnp.float32)

    h = mm(a_norm, mm(x, w1)) + b1
    h = jnp.maximum(h, 0.0)
    h = mm(a_norm, mm(h, w2)) + b2
    h = jnp.maximum(h, 0.0)
    logits = mm(h, w3) + b3
    return jax.nn.log_softmax(logits, axis=1)


def init_params(key, input_feats, hidden_channels, out_channels):
    k1, k2, k3 = jax.random.split(key, 3)
    # Deterministic glorot-style init (synthetic weights, not a checkpoint load).
    w1 = jax.random.normal(k1, (input_feats, hidden_channels), jnp.float32) / jnp.sqrt(
        jnp.float32(input_feats))
    b1 = jnp.zeros((1, hidden_channels), jnp.float32)
    w2 = jax.random.normal(k2, (hidden_channels, hidden_channels), jnp.float32) / jnp.sqrt(
        jnp.float32(hidden_channels))
    b2 = jnp.zeros((1, hidden_channels), jnp.float32)
    w3 = jax.random.normal(k3, (hidden_channels, out_channels), jnp.float32) / jnp.sqrt(
        jnp.float32(hidden_channels))
    b3 = jnp.zeros((1, out_channels), jnp.float32)
    return (w1, b1, w2, b2, w3, b3)


if __name__ == "__main__":
    N = 64            # small synthetic graph
    F = 1433          # input_feats from the module
    H = 32            # hidden_channels
    C = 7             # out_channels from the module
    E = 256           # directed edges before symmetrization

    key = jax.random.PRNGKey(0)
    k_src, k_off, k_x, k_params = jax.random.split(key, 4)

    # Random undirected graph with no self-loops.
    src = jax.random.randint(k_src, (E,), 0, N)
    off = jax.random.randint(k_off, (E,), 1, N)
    dst = (src + off) % N
    edge_index = jnp.stack(
        [jnp.concatenate([src, dst]), jnp.concatenate([dst, src])]
    ).astype(jnp.int32)                               # (2, 2E)

    x = jax.random.normal(k_x, (N, F), jnp.float32)
    params = init_params(k_params, F, H, C)

    # Adjacency normalization is O(N^2) XLA glue: compute once, reuse per call.
    a_norm = build_norm_adj(edge_index, N)

    out = jax.block_until_ready(gcn_forward(x, a_norm, params))
    assert out.shape == (N, C) and out.dtype == jnp.float32

    # log_softmax rows should (approximately) sum to 1 in prob space.
    assert bool(jnp.all(jnp.abs(jnp.sum(jnp.exp(out), axis=1) - 1.0) < 1e-3))

    # Agreement with a pure-JAX reference of identical numerics (loose tol for
    # bf16 rounding-path differences across padded-tile accumulation).
    ref = jax.block_until_ready(gcn_reference(x, a_norm, params))
    assert bool(jnp.max(jnp.abs(out - ref)) < 5e-2)

    print("KERNEL_OK")
</pallas_src>

<mosaic_0001>
module attributes {stable_mosaic.version = 11 : i64} {
  func.func @_gcn_kernel(%arg0: i32, %arg1: memref<128x128xbf16, #tpu.memory_space<vmem>>, %arg2: memref<128x1536xbf16, #tpu.memory_space<vmem>>, %arg3: memref<1536x128xbf16, #tpu.memory_space<vmem>>, %arg4: memref<1x128xf32, #tpu.memory_space<vmem>>, %arg5: memref<128x128xbf16, #tpu.memory_space<vmem>>, %arg6: memref<1x128xf32, #tpu.memory_space<vmem>>, %arg7: memref<128x128xbf16, #tpu.memory_space<vmem>>, %arg8: memref<1x128xf32, #tpu.memory_space<vmem>>, %arg9: memref<128x128xf32, #tpu.memory_space<vmem>>) attributes {dimension_semantics = [#tpu.dimension_semantics<arbitrary>], iteration_bounds = array<i64: 1>, scalar_prefetch = 0 : i64, scratch_operands = 0 : i64, tpu.core_type = #tpu.core_type<tc>, window_params = [{pipeline_mode = #tpu.pipeline_mode<synchronous>, transform_indices = @transform_0, window_bounds = array<i64: 128, 128>}, {pipeline_mode = #tpu.pipeline_mode<synchronous>, transform_indices = @transform_1, window_bounds = array<i64: 128, 1536>}, {pipeline_mode = #tpu.pipeline_mode<synchronous>, transform_indices = @transform_2, window_bounds = array<i64: 1536, 128>}, {pipeline_mode = #tpu.pipeline_mode<synchronous>, transform_indices = @transform_3, window_bounds = array<i64: 1, 128>}, {pipeline_mode = #tpu.pipeline_mode<synchronous>, transform_indices = @transform_4, window_bounds = array<i64: 128, 128>}, {pipeline_mode = #tpu.pipeline_mode<synchronous>, transform_indices = @transform_5, window_bounds = array<i64: 1, 128>}, {pipeline_mode = #tpu.pipeline_mode<synchronous>, transform_indices = @transform_6, window_bounds = array<i64: 128, 128>}, {pipeline_mode = #tpu.pipeline_mode<synchronous>, transform_indices = @transform_7, window_bounds = array<i64: 1, 128>}, {pipeline_mode = #tpu.pipeline_mode<synchronous>, transform_indices = @transform_8, window_bounds = array<i64: 128, 128>}]} {
    %c0 = arith.constant 0 : index
    %c0_0 = arith.constant 0 : index
    %0 = vector.load %arg1[%c0, %c0_0] : memref<128x128xbf16, #tpu.memory_space<vmem>>, vector<128x128xbf16>
    %c0_1 = arith.constant 0 : index
    %c0_2 = arith.constant 0 : index
    %1 = vector.load %arg2[%c0_1, %c0_2] : memref<128x1536xbf16, #tpu.memory_space<vmem>>, vector<128x1536xbf16>
    %c0_3 = arith.constant 0 : index
    %c0_4 = arith.constant 0 : index
    %2 = vector.load %arg3[%c0_3, %c0_4] : memref<1536x128xbf16, #tpu.memory_space<vmem>>, vector<1536x128xbf16>
    %cst = arith.constant dense<0.000000e+00> : vector<128x128xf32>
    %3 = tpu.matmul %1, %2, %cst {dimension_numbers = #tpu.dot_dimension_numbers<[1], [0], [0], [1], [0, 0, 1, 1], [], []>} : vector<128x1536xbf16>, vector<1536x128xbf16>, vector<128x128xf32> -> vector<128x128xf32>
    %4 = arith.truncf %3 : vector<128x128xf32> to vector<128x128xbf16>
    %cst_5 = arith.constant dense<0.000000e+00> : vector<128x128xf32>
    %5 = tpu.matmul %0, %4, %cst_5 {dimension_numbers = #tpu.dot_dimension_numbers<[1], [0], [0], [1], [0, 0, 1, 1], [], []>} : vector<128x128xbf16>, vector<128x128xbf16>, vector<128x128xf32> -> vector<128x128xf32>
    %c0_6 = arith.constant 0 : index
    %c0_7 = arith.constant 0 : index
    %6 = vector.load %arg4[%c0_6, %c0_7] : memref<1x128xf32, #tpu.memory_space<vmem>>, vector<1x128xf32>
    %7 = vector.broadcast %6 : vector<1x128xf32> to vector<128x128xf32>
    %8 = arith.addf %5, %7 : vector<128x128xf32>
    %cst_8 = arith.constant 0.000000e+00 : f32
    %9 = vector.broadcast %cst_8 : f32 to vector<128x128xf32>
    %10 = arith.maximumf %8, %9 : vector<128x128xf32>
    %11 = arith.truncf %10 : vector<128x128xf32> to vector<128x128xbf16>
    %c0_9 = arith.constant 0 : index
    %c0_10 = arith.constant 0 : index
    %12 = vector.load %arg5[%c0_9, %c0_10] : memref<128x128xbf16, #tpu.memory_space<vmem>>, vector<128x128xbf16>
    %cst_11 = arith.constant dense<0.000000e+00> : vector<128x128xf32>
    %13 = tpu.matmul %11, %12, %cst_11 {dimension_numbers = #tpu.dot_dimension_numbers<[1], [0], [0], [1], [0, 0, 1, 1], [], []>} : vector<128x128xbf16>, vector<128x128xbf16>, vector<128x128xf32> -> vector<128x128xf32>
    %14 = arith.truncf %13 : vector<128x128xf32> to vector<128x128xbf16>
    %cst_12 = arith.constant dense<0.000000e+00> : vector<128x128xf32>
    %15 = tpu.matmul %0, %14, %cst_12 {dimension_numbers = #tpu.dot_dimension_numbers<[1], [0], [0], [1], [0, 0, 1, 1], [], []>} : vector<128x128xbf16>, vector<128x128xbf16>, vector<128x128xf32> -> vector<128x128xf32>
    %c0_13 = arith.constant 0 : index
    %c0_14 = arith.constant 0 : index
    %16 = vector.load %arg6[%c0_13, %c0_14] : memref<1x128xf32, #tpu.memory_space<vmem>>, vector<1x128xf32>
    %17 = vector.broadcast %16 : vector<1x128xf32> to vector<128x128xf32>
    %18 = arith.addf %15, %17 : vector<128x128xf32>
    %cst_15 = arith.constant 0.000000e+00 : f32
    %19 = vector.broadcast %cst_15 : f32 to vector<128x128xf32>
    %20 = arith.maximumf %18, %19 : vector<128x128xf32>
    %21 = arith.truncf %20 : vector<128x128xf32> to vector<128x128xbf16>
    %c0_16 = arith.constant 0 : index
    %c0_17 = arith.constant 0 : index
    %22 = vector.load %arg7[%c0_16, %c0_17] : memref<128x128xbf16, #tpu.memory_space<vmem>>, vector<128x128xbf16>
    %cst_18 = arith.constant dense<0.000000e+00> : vector<128x128xf32>
    %23 = tpu.matmul %21, %22, %cst_18 {dimension_numbers = #tpu.dot_dimension_numbers<[1], [0], [0], [1], [0, 0, 1, 1], [], []>} : vector<128x128xbf16>, vector<128x128xbf16>, vector<128x128xf32> -> vector<128x128xf32>
    %c0_19 = arith.constant 0 : index
    %c0_20 = arith.constant 0 : index
    %24 = vector.load %arg8[%c0_19, %c0_20] : memref<1x128xf32, #tpu.memory_space<vmem>>, vector<1x128xf32>
    %25 = vector.broadcast %24 : vector<1x128xf32> to vector<128x128xf32>
    %26 = arith.addf %23, %25 : vector<128x128xf32>
    %cst_21 = arith.constant dense<0xFF800000> : vector<128xf32>
    %27 = vector.multi_reduction <maximumf>, %26, %cst_21 [1] : vector<128x128xf32> to vector<128xf32>
    %28 = vector.shape_cast %27 : vector<128xf32> to vector<128x1xf32>
    %29 = vector.broadcast %28 : vector<128x1xf32> to vector<128x128xf32>
    %30 = arith.subf %26, %29 : vector<128x128xf32>
    %31 = math.exp %30 : vector<128x128xf32>
    %cst_22 = arith.constant dense<0.000000e+00> : vector<128xf32>
    %32 = vector.multi_reduction <add>, %31, %cst_22 [1] : vector<128x128xf32> to vector<128xf32>
    %33 = vector.shape_cast %32 : vector<128xf32> to vector<128x1xf32>
    %34 = math.log %33 : vector<128x1xf32>
    %35 = vector.broadcast %34 : vector<128x1xf32> to vector<128x128xf32>
    %36 = arith.subf %30, %35 : vector<128x128xf32>
    %c0_23 = arith.constant 0 : index
    %c0_24 = arith.constant 0 : index
    %37 = vector.load %arg9[%c0_23, %c0_24] : memref<128x128xf32, #tpu.memory_space<vmem>>, vector<128x128xf32>
    tpu.vector_store %arg9[%c0_23, %c0_24], %36 {strides = array<i32>} : memref<128x128xf32, #tpu.memory_space<vmem>>, vector<128x128xf32>,
    return
  }
  func.func @transform_0(%arg0: i32) -> (i32, i32) {
    %c0_i32 = arith.constant 0 : i32
    %c0_i32_0 = arith.constant 0 : i32
    %c0_i32_1 = arith.constant 0 : i32
    return %c0_i32, %c0_i32_0 : i32, i32
  }
  func.func @transform_1(%arg0: i32) -> (i32, i32) {
    %c0_i32 = arith.constant 0 : i32
    %c0_i32_0 = arith.constant 0 : i32
    %c0_i32_1 = arith.constant 0 : i32
    return %c0_i32, %c0_i32_0 : i32, i32
  }
  func.func @transform_2(%arg0: i32) -> (i32, i32) {
    %c0_i32 = arith.constant 0 : i32
    %c0_i32_0 = arith.constant 0 : i32
    %c0_i32_1 = arith.constant 0 : i32
    return %c0_i32, %c0_i32_0 : i32, i32
  }
  func.func @transform_3(%arg0: i32) -> (i32, i32) {
    %c0_i32 = arith.constant 0 : i32
    %c0_i32_0 = arith.constant 0 : i32
    %c0_i32_1 = arith.constant 0 : i32
    return %c0_i32, %c0_i32_0 : i32, i32
  }
  func.func @transform_4(%arg0: i32) -> (i32, i32) {
    %c0_i32 = arith.constant 0 : i32
    %c0_i32_0 = arith.constant 0 : i32
    %c0_i32_1 = arith.constant 0 : i32
    return %c0_i32, %c0_i32_0 : i32, i32
  }
  func.func @transform_5(%arg0: i32) -> (i32, i32) {
    %c0_i32 = arith.constant 0 : i32
    %c0_i32_0 = arith.constant 0 : i32
    %c0_i32_1 = arith.constant 0 : i32
    return %c0_i32, %c0_i32_0 : i32, i32
  }
  func.func @transform_6(%arg0: i32) -> (i32, i32) {
    %c0_i32 = arith.constant 0 : i32
    %c0_i32_0 = arith.constant 0 : i32
    %c0_i32_1 = arith.constant 0 : i32
    return %c0_i32, %c0_i32_0 : i32, i32
  }
  func.func @transform_7(%arg0: i32) -> (i32, i32) {
    %c0_i32 = arith.constant 0 : i32
    %c0_i32_0 = arith.constant 0 : i32
    %c0_i32_1 = arith.constant 0 : i32
    return %c0_i32, %c0_i32_0 : i32, i32
  }
  func.func @transform_8(%arg0: i32) -> (i32, i32) {
    %c0_i32 = arith.constant 0 : i32
    %c0_i32_0 = arith.constant 0 : i32
    %c0_i32_1 = arith.constant 0 : i32
    return %c0_i32, %c0_i32_0 : i32, i32
  }
}

</mosaic_0001>

<bundles_post_ra>
// kernel: gcn_forward.1
= control target key start
LH: loop header
LB: loop body
LE: loop exit
PB: predicated region body
PF: predicated region fallthrough
CT: control target
= control target key end

     0   :  { %s4886_s2 = inlined_call_operand.vmem [shape: bf16[1536,128], index: 2, kind: input, shape index: {}]   ;;  %s4887_s1 = inlined_call_operand.vmem [shape: bf16[128,1536], index: 1, kind: input, shape index: {}]   ;;  %s4888_s0 = inlined_call_operand.vmem [shape: bf16[128,128], index: 0, kind: input, shape index: {}]   ;;  %s4889_s4 = inlined_call_operand.vmem [shape: bf16[128,128], index: 4, kind: input, shape index: {}]   ;;  %s4890_s3 = inlined_call_operand.vmem [shape: f32[1,128], index: 3, kind: input, shape index: {}]   ;;  %s4891_s6 = inlined_call_operand.vmem [shape: bf16[128,128], index: 6, kind: input, shape index: {}]   ;;  %s4892_s5 = inlined_call_operand.vmem [shape: f32[1,128], index: 5, kind: input, shape index: {}]   ;;  %s4893_s7 = inlined_call_operand.vmem [shape: f32[1,128], index: 7, kind: input, shape index: {}]   ;;  %s4894_s8 = inlined_call_operand.vmem [shape: f32[128,128], index: 8, kind: output, shape index: {}]  }
   0x1   :  { %v3596_v0 = vld [vmem:[%s4886_s2 + $0x40] sm:$0xff]   ;;  %v3600_v4 = vld [vmem:[%s4886_s2 + $0x48] sm:$0xff]   ;;  %v3604_v8 = vld [vmem:[%s4886_s2 + $0x50] sm:$0xff]  }
   0x2   :  { %v3597_v1 = vld [vmem:[%s4886_s2 + $0xc0] sm:$0xff]   ;;  %3020 = vmatprep.subr.bf16.mxu0 %v3596_v0  ;;  %v3601_v5 = vld [vmem:[%s4886_s2 + $0xc8] sm:$0xff]   ;;  %v3605_v9 = vld [vmem:[%s4886_s2 + $0xd0] sm:$0xff]  }
   0x3   :  { %v3598_v2 = vld [vmem:[%s4886_s2] sm:$0xff]   ;;  %3084 = vmatprep.subr.bf16.mxu1 %v3597_v1  ;;  %v3602_v6 = vld [vmem:[%s4886_s2 + $0x8] sm:$0xff]   ;;  %v3606_v10 = vld [vmem:[%s4886_s2 + $0x10] sm:$0xff]  }
   0x4   :  { %v3599_v3 = vld [vmem:[%s4886_s2 + $0x80] sm:$0xff]   ;;  %3021 = vmatpush3.bf16.msra.mxu0 %v3598_v2  ;;  %v3603_v7 = vld [vmem:[%s4886_s2 + $0x88] sm:$0xff]   ;;  %v3607_v11 = vld [vmem:[%s4886_s2 + $0x90] sm:$0xff]  }
   0x5   :  { %3085 = vmatpush3.bf16.msra.mxu1 %v3599_v3  ;;  %3022 = vmatprep.subr.bf16.mxu0 %v3600_v4  ;;  %v3608_v12 = vld [vmem:[%s4886_s2 + $0x58] sm:$0xff]   ;;  %v3612_v16 = vld [vmem:[%s4886_s2 + $0x60] sm:$0xff]   ;;  %v3616_v20 = vld [vmem:[%s4886_s2 + $0x68] sm:$0xff]  }
   0x6   :  { %3086 = vmatprep.subr.bf16.mxu1 %v3601_v5  ;;  %v3609_v13 = vld [vmem:[%s4886_s2 + $0xd8] sm:$0xff]   ;;  %v3613_v17 = vld [vmem:[%s4886_s2 + $0xe0] sm:$0xff]   ;;  %v3617_v21 = vld [vmem:[%s4886_s2 + $0xe8] sm:$0xff]  }
   0x7   :  { %v3610_v14 = vld [vmem:[%s4886_s2 + $0x18] sm:$0xff]   ;;  %v3614_v18 = vld [vmem:[%s4886_s2 + $0x20] sm:$0xff]   ;;  %v3618_v22 = vld [vmem:[%s4886_s2 + $0x28] sm:$0xff]  }
   0x8   :  { %3023 = vmatpush3.bf16.msra.mxu0 %v3602_v6  ;;  %v3611_v15 = vld [vmem:[%s4886_s2 + $0x98] sm:$0xff]   ;;  %v3615_v19 = vld [vmem:[%s4886_s2 + $0xa0] sm:$0xff]   ;;  %v3619_v23 = vld [vmem:[%s4886_s2 + $0xa8] sm:$0xff]  }
   0x9   :  { %3087 = vmatpush3.bf16.msra.mxu1 %v3603_v7  ;;  %3024 = vmatprep.subr.bf16.mxu0 %v3604_v8  ;;  %v3620_v24 = vld [vmem:[%s4886_s2 + $0x70] sm:$0xff]   ;;  %v3624_v28 = vld [vmem:[%s4886_s2 + $0x78] sm:$0xff]   ;;  %v3634_v36 = vld [vmem:[%s4886_s2 + $0x140] sm:$0xff]  }
   0xa   :  { %3088 = vmatprep.subr.bf16.mxu1 %v3605_v9  ;;  %v3621_v25 = vld [vmem:[%s4886_s2 + $0xf0] sm:$0xff]   ;;  %v3625_v29 = vld [vmem:[%s4886_s2 + $0xf8] sm:$0xff]   ;;  %v3635_v37 = vld [vmem:[%s4886_s2 + $0x100] sm:$0xff]  }
   0xb   :  { %v3622_v26 = vld [vmem:[%s4886_s2 + $0x30] sm:$0xff]   ;;  %v3626_v30 = vld [vmem:[%s4886_s2 + $0x38] sm:$0xff]   ;;  %v3636_v38 = vld [vmem:[%s4886_s2 + $0x1c0] sm:$0xff]  }
   0xc   :  { %3025 = vmatpush3.bf16.msra.mxu0 %v3606_v10  ;;  %v3623_v27 = vld [vmem:[%s4886_s2 + $0xb0] sm:$0xff]   ;;  %v3627_v31 = vld [vmem:[%s4886_s2 + $0xb8] sm:$0xff]   ;;  %v3641_v41 = vld [vmem:[%s4886_s2 + $0x180] sm:$0xff]  }
   0xd   :  { %3089 = vmatpush3.bf16.msra.mxu1 %v3607_v11  ;;  %3026 = vmatprep.subr.bf16.mxu0 %v3608_v12  ;;  %v3628_v32 = vld [vmem:[%s4887_s1] ss:$48 sps:$4 sm:$0xff]   ;;  %v3630_v33 = vld [vmem:[%s4887_s1 + $0x4] ss:$48 sps:$4 sm:$0xff]   ;;  %v3631_v34 = vld [vmem:[%s4887_s1 + $0x8] ss:$48 sps:$4 sm:$0xff]  }
   0xe   :  { %3090 = vmatprep.subr.bf16.mxu1 %v3609_v13  ;;  %v3633_v35 = vld [vmem:[%s4887_s1 + $0xc] ss:$48 sps:$4 sm:$0xff]   ;;  %1422 = vmatprep.mubr.bf16.mxu0 %v3630_v33  ;;  %v3637_v39 = vld [vmem:[%s4887_s1 + $0x64] ss:$48 sps:$4 sm:$0xff]   ;;  %v3642_v42 = vld [vmem:[%s4887_s1 + $0x60] ss:$48 sps:$4 sm:$0xff]  }
   0xf   :  { %1519 = vmatprep.mubr.bf16.mxu1 %v3633_v35  ;;  %v3639_v40 = vld [vmem:[%s4887_s1 + $0x6c] ss:$48 sps:$4 sm:$0xff]   ;;  %v3643_v43 = vld [vmem:[%s4887_s1 + $0x68] ss:$48 sps:$4 sm:$0xff]   ;;  %v3647_v47 = vld [vmem:[%s4887_s1 + $0xc4] ss:$48 sps:$4 sm:$0xff]  }
  0x10   :  { %3027 = vmatpush3.bf16.msra.mxu0 %v3610_v14  ;;  %v3644_v44 = vld [vmem:[%s4886_s2 + $0x148] sm:$0xff]   ;;  %v3652_v50 = vld [vmem:[%s4887_s1 + $0xc0] ss:$48 sps:$4 sm:$0xff]   ;;  %v3657_v55 = vld [vmem:[%s4887_s1 + $0x124] ss:$48 sps:$4 sm:$0xff]  }
  0x11   :  { %3091 = vmatpush3.bf16.msra.mxu1 %v3611_v15  ;;  %3028 = vmatprep.subr.bf16.mxu0 %v3612_v16  ;;  %v3645_v45 = vld [vmem:[%s4886_s2 + $0x108] sm:$0xff]   ;;  %v3654_v52 = vld [vmem:[%s4886_s2 + $0x150] sm:$0xff]   ;;  %v3664_v60 = vld [vmem:[%s4886_s2 + $0x158] sm:$0xff]  }
  0x12   :  { %3092 = vmatprep.subr.bf16.mxu1 %v3613_v17  ;;  %v3646_v46 = vld [vmem:[%s4886_s2 + $0x1c8] sm:$0xff]   ;;  %v3655_v53 = vld [vmem:[%s4886_s2 + $0x110] sm:$0xff]   ;;  %v3665_v61 = vld [vmem:[%s4886_s2 + $0x118] sm:$0xff]  }
  0x13   :  { %v3649_v48 = vld [vmem:[%s4887_s1 + $0xcc] ss:$48 sps:$4 sm:$0xff]   ;;  %v3653_v51 = vld [vmem:[%s4887_s1 + $0xc8] ss:$48 sps:$4 sm:$0xff]   ;;  %v3656_v54 = vld [vmem:[%s4886_s2 + $0x1d0] sm:$0xff]  }
  0x14   :  { %3029 = vmatpush3.bf16.msra.mxu0 %v3614_v18  ;;  %v3651_v49 = vld [vmem:[%s4886_s2 + $0x188] sm:$0xff]   ;;  %v3661_v57 = vld [vmem:[%s4886_s2 + $0x190] sm:$0xff]   ;;  %v3666_v62 = vld [vmem:[%s4886_s2 + $0x1d8] sm:$0xff]  }
  0x15   :  { %3093 = vmatpush3.bf16.msra.mxu1 %v3615_v19  ;;  %3030 = vmatprep.subr.bf16.mxu0 %v3616_v20  ;;  %v3659_v56 = vld [vmem:[%s4887_s1 + $0x12c] ss:$48 sps:$4 sm:$0xff]   ;;  %v3662_v58 = vld [vmem:[%s4887_s1 + $0x120] ss:$48 sps:$4 sm:$0xff]   ;;  %v3663_v59 = vld [vmem:[%s4887_s1 + $0x128] ss:$48 sps:$4 sm:$0xff]  }
  0x16   :  { %3094 = vmatprep.subr.bf16.mxu1 %v3617_v21  ;;  %v3667_v63 = vld [vmem:[%s4887_s1 + $0x184] ss:$48 sps:$4 sm:$0xff]   ;;  %v3669_v0 = vld [vmem:[%s4887_s1 + $0x18c] ss:$48 sps:$4 sm:$0xff]   ;;  %v3672_v2 = vld [vmem:[%s4887_s1 + $0x180] ss:$48 sps:$4 sm:$0xff]  }
  0x17   :  { %v3671_v1 = vld [vmem:[%s4886_s2 + $0x198] sm:$0xff]   ;;  %v3674_v3 = vld [vmem:[%s4886_s2 + $0x160] sm:$0xff]   ;;  %v3684_v10 = vld [vmem:[%s4886_s2 + $0x168] sm:$0xff]  }
  0x18   :  { %3031 = vmatpush3.bf16.msra.mxu0 %v3618_v22  ;;  %v3673_v4 = vld [vmem:[%s4887_s1 + $0x188] ss:$48 sps:$4 sm:$0xff]   ;;  %v3675_v5 = vld [vmem:[%s4886_s2 + $0x120] sm:$0xff]   ;;  %v3679_v8 = vld [vmem:[%s4887_s1 + $0x1ec] ss:$48 sps:$4 sm:$0xff]  }
  0x19   :  { %3095 = vmatpush3.bf16.msra.mxu1 %v3619_v23  ;;  %3032 = vmatprep.subr.bf16.mxu0 %v3620_v24  ;;  %v3676_v6 = vld [vmem:[%s4886_s2 + $0x1e0] sm:$0xff]   ;;  %v3685_v11 = vld [vmem:[%s4886_s2 + $0x128] sm:$0xff]   ;;  %v3694_v18 = vld [vmem:[%s4886_s2 + $0x170] sm:$0xff]  }
  0x1a   :  { %3096 = vmatprep.subr.bf16.mxu1 %v3621_v25  ;;  %v3677_v7 = vld [vmem:[%s4887_s1 + $0x1e4] ss:$48 sps:$4 sm:$0xff]   ;;  %v3682_v12 = vld [vmem:[%s4887_s1 + $0x1e0] ss:$48 sps:$4 sm:$0xff]   ;;  %v3686_v13 = vld [vmem:[%s4886_s2 + $0x1e8] sm:$0xff]  }
  0x1b   :  { %v3681_v9 = vld [vmem:[%s4886_s2 + $0x1a0] sm:$0xff]   ;;  %v3683_v14 = vld [vmem:[%s4887_s1 + $0x1e8] ss:$48 sps:$4 sm:$0xff]   ;;  %v3689_v17 = vld [vmem:[%s4887_s1 + $0x24c] ss:$48 sps:$4 sm:$0xff]  }
  0x1c   :  { %3033 = vmatpush3.bf16.msra.mxu0 %v3622_v26  ;;  %v3687_v15 = vld [vmem:[%s4887_s1 + $0x244] ss:$48 sps:$4 sm:$0xff]   ;;  %v3691_v16 = vld [vmem:[%s4886_s2 + $0x1a8] sm:$0xff]   ;;  %v3692_v21 = vld [vmem:[%s4887_s1 + $0x240] ss:$48 sps:$4 sm:$0xff]  }
  0x1d   :  { %3097 = vmatpush3.bf16.msra.mxu1 %v3623_v27  ;;  %3034 = vmatprep.subr.bf16.mxu0 %v3624_v28  ;;  %v3695_v19 = vld [vmem:[%s4886_s2 + $0x130] sm:$0xff]   ;;  %v3693_v22 = vld [vmem:[%s4887_s1 + $0x248] ss:$48 sps:$4 sm:$0xff]   ;;  %v3699_v25 = vld [vmem:[%s4887_s1 + $0x2ac] ss:$48 sps:$4 sm:$0xff]  }
  0x1e   :  { %3098 = vmatprep.subr.bf16.mxu1 %v3625_v29  ;;  %v3696_v20 = vld [vmem:[%s4886_s2 + $0x1f0] sm:$0xff]   ;;  %v3704_v26 = vld [vmem:[%s4886_s2 + $0x178] sm:$0xff]   ;;  %v3714_v33 = vld [vmem:[%s4886_s2 + $0x240] sm:$0xff]  }
  0x1f   :  { %v3697_v23 = vld [vmem:[%s4887_s1 + $0x2a4] ss:$48 sps:$4 sm:$0xff]   ;;  %v3705_v27 = vld [vmem:[%s4886_s2 + $0x1f8] sm:$0xff]  }
  0x20   :  { %3035 = vmatpush3.bf16.msra.mxu0 %v3626_v30  ;;  %v3701_v24 = vld [vmem:[%s4886_s2 + $0x1b0] sm:$0xff]   ;;  %v3706_v28 = vld [vmem:[%s4886_s2 + $0x138] sm:$0xff]   ;;  %v3716_v35 = vld [vmem:[%s4886_s2 + $0x2c0] sm:$0xff]  }
  0x21   :  { %3099 = vmatpush3.bf16.msra.mxu1 %v3627_v31  ;;  %3148 = vmatprep.subr.bf16.mxu0 %v3634_v36  ;;  %v3707_v29 = vld [vmem:[%s4886_s2 + $0x1b8] sm:$0xff]   ;;  %v3702_v30 = vld [vmem:[%s4887_s1 + $0x2a0] ss:$48 sps:$4 sm:$0xff]  }
  0x22   :  { %3212 = vmatprep.subr.bf16.mxu1 %v3636_v38  ;;  %v3703_v31 = vld [vmem:[%s4887_s1 + $0x2a8] ss:$48 sps:$4 sm:$0xff]   ;;  %v3708_v36 = vld [vmem:[%s4887_s1 + $0x10] ss:$48 sps:$4 sm:$0xff]  }
  0x23   :  { %1423 = vmatmul.mubr.bf16.vlgmr.msra.gmra.mrb[0].mxu0 %v3628_v32  ;;  %v3710_v32 = vld [vmem:[%s4887_s1 + $0x14] ss:$48 sps:$4 sm:$0xff]  }
  0x24   :  { %1520 = vmatmul.mubr.bf16.vlgmr.msra.gmra.mrb[0].mxu1 %v3631_v34  ;;  %3149 = vmatpush3.bf16.msra.mxu0 %v3635_v37  ;;  %v3713_v34 = vld [vmem:[%s4887_s1 + $0x1c] ss:$48 sps:$4 sm:$0xff]   ;;  %v3711_v37 = vld [vmem:[%s4887_s1 + $0x18] ss:$48 sps:$4 sm:$0xff]   ;;  %v3715_v38 = vld [vmem:[%s4886_s2 + $0x200] sm:$0xff]  }
  0x25   :  { %1430 = vmatprep.mubr.bf16.mxu0 %v3637_v39  ;;  %1527 = vmatprep.mubr.bf16.mxu1 %v3639_v40  ;;  %v3717_v39 = vld [vmem:[%s4887_s1 + $0x74] ss:$48 sps:$4 sm:$0xff]   ;;  %v3719_v40 = vld [vmem:[%s4887_s1 + $0x7c] ss:$48 sps:$4 sm:$0xff]  }
  0x26   :  { %3213 = vmatpush3.bf16.msra.mxu1 %v3641_v41  ;;  %3150 = vmatprep.subr.bf16.mxu0 %v3644_v44  ;;  %v3721_v41 = vld [vmem:[%s4886_s2 + $0x280] sm:$0xff]   ;;  %v3725_v44 = vld [vmem:[%s4886_s2 + $0x208] sm:$0xff]  }
  0x27   :  { %3214 = vmatprep.subr.bf16.mxu1 %v3646_v46  ;;  %v3734_v46 = vld [vmem:[%s4886_s2 + $0x250] sm:$0xff]  }
  0x28   :  { %3151 = vmatpush3.bf16.msra.mxu0 %v3645_v45  ;;  %v3722_v45 = vld [vmem:[%s4887_s1 + $0x70] ss:$48 sps:$4 sm:$0xff]  }
  0x29   :  { %3152 = vmatprep.subr.bf16.mxu0 %v3654_v52  ;;  %v3735_v52 = vld [vmem:[%s4886_s2 + $0x210] sm:$0xff]  }
  0x2a   :  { %3215 = vmatpush3.bf16.msra.mxu1 %v3651_v49  ;;  %v3731_v49 = vld [vmem:[%s4886_s2 + $0x288] sm:$0xff]  }
  0x2b   :  { %1431 = vmatmul.mubr.bf16.gmra.mrb[4].mxu0 %v3642_v42  ;;  %3216 = vmatprep.subr.bf16.mxu1 %v3656_v54  ;;  %v3724_v42 = vld [vmem:[%s4886_s2 + $0x248] sm:$0xff]   ;;  %v3744_v54 = vld [vmem:[%s4886_s2 + $0x258] sm:$0xff]  }
  0x2c   :  { %1528 = vmatmul.mubr.bf16.gmra.mrb[4].mxu1 %v3643_v43  ;;  %1438 = vmatprep.mubr.bf16.mxu0 %v3647_v47  ;;  %v3726_v43 = vld [vmem:[%s4886_s2 + $0x2c8] sm:$0xff]  }
  0x2d   :  { %1535 = vmatprep.mubr.bf16.mxu1 %v3649_v48  ;;  %3153 = vmatpush3.bf16.msra.mxu0 %v3655_v53  ;;  %v3723_v47 = vld [vmem:[%s4887_s1 + $0x78] ss:$48 sps:$4 sm:$0xff]   ;;  %v3727_v48 = vld [vmem:[%s4887_s1 + $0xd4] ss:$48 sps:$4 sm:$0xff]  }
  0x2e   :  { %3217 = vmatpush3.bf16.msra.mxu1 %v3661_v57  ;;  %3154 = vmatprep.subr.bf16.mxu0 %v3664_v60  ;;  %v3741_v53 = vld [vmem:[%s4886_s2 + $0x290] sm:$0xff]   ;;  %v3746_v57 = vld [vmem:[%s4886_s2 + $0x2d8] sm:$0xff]  }
  0x2f   :  { %3218 = vmatprep.subr.bf16.mxu1 %v3666_v62  ;;  %v3751_v60 = vld [vmem:[%s4886_s2 + $0x298] sm:$0xff]   ;;  %v3754_v62 = vld [vmem:[%s4886_s2 + $0x260] sm:$0xff]  }
  0x31   :  { %3155 = vmatpush3.bf16.msra.mxu0 %v3665_v61  ;;  %v3739_v61 = vld [vmem:[%s4887_s1 + $0x13c] ss:$48 sps:$4 sm:$0xff]  }
  0x32   :  { %3219 = vmatpush3.bf16.msra.mxu1 %v3671_v1  ;;  %3156 = vmatprep.subr.bf16.mxu0 %v3674_v3  ;;  %v3742_v1 = vld [vmem:[%s4887_s1 + $0x130] ss:$48 sps:$4 sm:$0xff]   ;;  %v3747_v3 = vld [vmem:[%s4887_s1 + $0x194] ss:$48 sps:$4 sm:$0xff]  }
  0x33   :  { %1439 = vmatmul.mubr.bf16.gmra.mrb[8].mxu0 %v3652_v50  ;;  %3220 = vmatprep.subr.bf16.mxu1 %v3676_v6  ;;  %v3736_v50 = vld [vmem:[%s4886_s2 + $0x2d0] sm:$0xff]   ;;  %v3764_v6 = vld [vmem:[%s4886_s2 + $0x268] sm:$0xff]  }
  0x34   :  { %1536 = vmatmul.mubr.bf16.gmra.mrb[8].mxu1 %v3653_v51  ;;  %1446 = vmatprep.mubr.bf16.mxu0 %v3657_v55  ;;  %v3729_v51 = vld [vmem:[%s4887_s1 + $0xdc] ss:$48 sps:$4 sm:$0xff]  }
  0x35   :  { %1543 = vmatprep.mubr.bf16.mxu1 %v3659_v56  ;;  %3157 = vmatpush3.bf16.msra.mxu0 %v3675_v5  ;;  %v3745_v55 = vld [vmem:[%s4886_s2 + $0x218] sm:$0xff]   ;;  %v3732_v56 = vld [vmem:[%s4887_s1 + $0xd0] ss:$48 sps:$4 sm:$0xff]  }
  0x36   :  { %3221 = vmatpush3.bf16.msra.mxu1 %v3681_v9  ;;  %3158 = vmatprep.subr.bf16.mxu0 %v3684_v10  ;;  %v3749_v5 = vld [vmem:[%s4887_s1 + $0x19c] ss:$48 sps:$4 sm:$0xff]   ;;  %v3752_v9 = vld [vmem:[%s4887_s1 + $0x190] ss:$48 sps:$4 sm:$0xff]   ;;  %v3753_v10 = vld [vmem:[%s4887_s1 + $0x198] ss:$48 sps:$4 sm:$0xff]  }
  0x37   :  { %3222 = vmatprep.subr.bf16.mxu1 %v3686_v13  ;;  %v3759_v13 = vld [vmem:[%s4887_s1 + $0x1fc] ss:$48 sps:$4 sm:$0xff]  }
  0x39   :  { %3159 = vmatpush3.bf16.msra.mxu0 %v3685_v11  ;;  %v3757_v11 = vld [vmem:[%s4887_s1 + $0x1f4] ss:$48 sps:$4 sm:$0xff]  }
  0x3a   :  { %3223 = vmatpush3.bf16.msra.mxu1 %v3691_v16  ;;  %3160 = vmatprep.subr.bf16.mxu0 %v3694_v18  ;;  %v3776_v16 = vld [vmem:[%s4886_s2 + $0x2f0] sm:$0xff]  }
  0x3b   :  { %1447 = vmatmul.mubr.bf16.gmra.mrb[12].mxu0 %v3662_v58  ;;  %3224 = vmatprep.subr.bf16.mxu1 %v3696_v20  ;;  %v3733_v58 = vld [vmem:[%s4887_s1 + $0xd8] ss:$48 sps:$4 sm:$0xff]   ;;  %v3762_v18 = vld [vmem:[%s4887_s1 + $0x1f0] ss:$48 sps:$4 sm:$0xff]   ;;  %v3767_v20 = vld [vmem:[%s4887_s1 + $0x254] ss:$48 sps:$4 sm:$0xff]  }
  0x3c   :  { %1544 = vmatmul.mubr.bf16.gmra.mrb[12].mxu1 %v3663_v59  ;;  %1454 = vmatprep.mubr.bf16.mxu0 %v3667_v63  ;;  %v3737_v59 = vld [vmem:[%s4887_s1 + $0x134] ss:$48 sps:$4 sm:$0xff]  }
  0x3d   :  { %1551 = vmatprep.mubr.bf16.mxu1 %v3669_v0  ;;  %3161 = vmatpush3.bf16.msra.mxu0 %v3695_v19  ;;  %v3755_v63 = vld [vmem:[%s4886_s2 + $0x220] sm:$0xff]   ;;  %v3763_v19 = vld [vmem:[%s4887_s1 + $0x1f8] ss:$48 sps:$4 sm:$0xff]  }
  0x3e   :  { %3225 = vmatpush3.bf16.msra.mxu1 %v3701_v24  ;;  %3162 = vmatprep.subr.bf16.mxu0 %v3704_v26  ;;  %v3756_v0 = vld [vmem:[%s4886_s2 + $0x2e0] sm:$0xff]   ;;  %v3786_v24 = vld [vmem:[%s4886_s2 + $0x238] sm:$0xff]  }
  0x3f   :  { %3226 = vmatprep.subr.bf16.mxu1 %v3705_v27  ;;  %v3772_v26 = vld [vmem:[%s4887_s1 + $0x250] ss:$48 sps:$4 sm:$0xff]   ;;  %v3773_v27 = vld [vmem:[%s4887_s1 + $0x258] ss:$48 sps:$4 sm:$0xff]  }
  0x41   :  { %3163 = vmatpush3.bf16.msra.mxu0 %v3706_v28  ;;  %v3777_v28 = vld [vmem:[%s4887_s1 + $0x2b4] ss:$48 sps:$4 sm:$0xff]  }
  0x42   :  { %3227 = vmatpush3.bf16.msra.mxu1 %v3707_v29  ;;  %3276 = vmatprep.subr.bf16.mxu0 %v3714_v33  ;;  %v3779_v29 = vld [vmem:[%s4887_s1 + $0x2bc] ss:$48 sps:$4 sm:$0xff]  }
  0x43   :  { %1455 = vmatmul.mubr.bf16.gmra.mrb[16].mxu0 %v3672_v2  ;;  %3340 = vmatprep.subr.bf16.mxu1 %v3716_v35  ;;  %v3743_v2 = vld [vmem:[%s4887_s1 + $0x138] ss:$48 sps:$4 sm:$0xff]   ;;  %v3793_v33 = vld [vmem:[%s4887_s1 + $0x2c] ss:$48 sps:$4 sm:$0xff]  }
  0x44   :  { %1552 = vmatmul.mubr.bf16.gmra.mrb[16].mxu1 %v3673_v4  ;;  %1462 = vmatprep.mubr.bf16.mxu0 %v3677_v7  ;;  %v3761_v4 = vld [vmem:[%s4886_s2 + $0x2a0] sm:$0xff]   ;;  %v3765_v7 = vld [vmem:[%s4886_s2 + $0x228] sm:$0xff]  }
  0x45   :  { %1559 = vmatprep.mubr.bf16.mxu1 %v3679_v8  ;;  %v3766_v8 = vld [vmem:[%s4886_s2 + $0x2e8] sm:$0xff]  }
  0x46   :  { %v3791_v35 = vld [vmem:[%s4887_s1 + $0x28] ss:$48 sps:$4 sm:$0xff]  }
  0x4b   :  { %1463 = vmatmul.mubr.bf16.gmra.mrb[20].mxu0 %v3682_v12  ;;  %v3771_v12 = vld [vmem:[%s4886_s2 + $0x2a8] sm:$0xff]  }
  0x4c   :  { %1560 = vmatmul.mubr.bf16.gmra.mrb[20].mxu1 %v3683_v14  ;;  %1470 = vmatprep.mubr.bf16.mxu0 %v3687_v15  ;;  %v3774_v14 = vld [vmem:[%s4886_s2 + $0x270] sm:$0xff]  }
  0x4d   :  { %1567 = vmatprep.mubr.bf16.mxu1 %v3689_v17  ;;  %v3775_v15 = vld [vmem:[%s4886_s2 + $0x230] sm:$0xff]  }
  0x4e   :  { %v3781_v17 = vld [vmem:[%s4886_s2 + $0x2b0] sm:$0xff]  }
  0x53   :  { %1471 = vmatmul.mubr.bf16.gmra.mrb[24].mxu0 %v3692_v21  ;;  %v3784_v21 = vld [vmem:[%s4886_s2 + $0x278] sm:$0xff]  }
  0x54   :  { %1568 = vmatmul.mubr.bf16.gmra.mrb[24].mxu1 %v3693_v22  ;;  %1478 = vmatprep.mubr.bf16.mxu0 %v3697_v23  ;;  %v3769_v22 = vld [vmem:[%s4887_s1 + $0x25c] ss:$48 sps:$4 sm:$0xff]  }
  0x55   :  { %1575 = vmatprep.mubr.bf16.mxu1 %v3699_v25  ;;  %v3785_v23 = vld [vmem:[%s4886_s2 + $0x2f8] sm:$0xff]  }
  0x56   :  { %v3787_v25 = vld [vmem:[%s4886_s2 + $0x2b8] sm:$0xff]  }
  0x5b   :  { %1479 = vmatmul.mubr.bf16.gmra.mrb[28].mxu0 %v3702_v30  ;;  %v3782_v30 = vld [vmem:[%s4887_s1 + $0x2b0] ss:$48 sps:$4 sm:$0xff]  }
  0x5c   :  { %1576 = vmatmul.mubr.bf16.gmra.mrb[28].mxu1 %v3703_v31  ;;  %1616 = vmatprep.mubr.bf16.mxu0 %v3710_v32  ;;  %v3783_v31 = vld [vmem:[%s4887_s1 + $0x2b8] ss:$48 sps:$4 sm:$0xff]   ;;  %v3790_v32 = vld [vmem:[%s4887_s1 + $0x24] ss:$48 sps:$4 sm:$0xff]  }
  0x5d   :  { %1713 = vmatprep.mubr.bf16.mxu1 %v3713_v34  ;;  %v3788_v34 = vld [vmem:[%s4887_s1 + $0x20] ss:$48 sps:$4 sm:$0xff]  }
  0x63   :  { %1617 = vmatmul.mubr.bf16.vlgmr.msra.gmra.mrb[32].mxu0 %v3708_v36  ;;  %v3794_v36 = vld [vmem:[%s4887_s1 + $0x84] ss:$48 sps:$4 sm:$0xff]  }
  0x64   :  { %1714 = vmatmul.mubr.bf16.vlgmr.msra.gmra.mrb[32].mxu1 %v3711_v37  ;;  %3277 = vmatpush3.bf16.msra.mxu0 %v3715_v38  ;;  %v3796_v37 = vld [vmem:[%s4887_s1 + $0x8c] ss:$48 sps:$4 sm:$0xff]   ;;  %v3798_v38 = vld [vmem:[%s4887_s1 + $0x80] ss:$48 sps:$4 sm:$0xff]  }
  0x65   :  { %1624 = vmatprep.mubr.bf16.mxu0 %v3717_v39  ;;  %1721 = vmatprep.mubr.bf16.mxu1 %v3719_v40  ;;  %v3799_v39 = vld [vmem:[%s4887_s1 + $0x88] ss:$48 sps:$4 sm:$0xff]   ;;  %v3800_v40 = vld [vmem:[%s4887_s1 + $0xe4] ss:$48 sps:$4 sm:$0xff]  }
  0x66   :  { %3341 = vmatpush3.bf16.msra.mxu1 %v3721_v41  ;;  %3278 = vmatprep.subr.bf16.mxu0 %v3724_v42  ;;  %v3802_v41 = vld [vmem:[%s4887_s1 + $0xec] ss:$48 sps:$4 sm:$0xff]   ;;  %v3804_v42 = vld [vmem:[%s4887_s1 + $0xe0] ss:$48 sps:$4 sm:$0xff]  }
  0x67   :  { %3342 = vmatprep.subr.bf16.mxu1 %v3726_v43  ;;  %v3805_v43 = vld [vmem:[%s4887_s1 + $0xe8] ss:$48 sps:$4 sm:$0xff]  }
  0x68   :  { %3279 = vmatpush3.bf16.msra.mxu0 %v3725_v44  ;;  %v3806_v44 = vld [vmem:[%s4887_s1 + $0x144] ss:$48 sps:$4 sm:$0xff]  }
  0x69   :  { %3280 = vmatprep.subr.bf16.mxu0 %v3734_v46  ;;  %v3810_v46 = vld [vmem:[%s4887_s1 + $0x140] ss:$48 sps:$4 sm:$0xff]  }
  0x6a   :  { %3343 = vmatpush3.bf16.msra.mxu1 %v3731_v49  ;;  %v3814_v49 = vld [vmem:[%s4887_s1 + $0x1ac] ss:$48 sps:$4 sm:$0xff]  }
  0x6b   :  { %1625 = vmatmul.mubr.bf16.gmra.mrb[36].mxu0 %v3722_v45  ;;  %3344 = vmatprep.subr.bf16.mxu1 %v3736_v50  ;;  %v3808_v45 = vld [vmem:[%s4887_s1 + $0x14c] ss:$48 sps:$4 sm:$0xff]   ;;  %v3816_v50 = vld [vmem:[%s4887_s1 + $0x1a0] ss:$48 sps:$4 sm:$0xff]  }
  0x6c   :  { %1722 = vmatmul.mubr.bf16.gmra.mrb[36].mxu1 %v3723_v47  ;;  %1632 = vmatprep.mubr.bf16.mxu0 %v3727_v48  ;;  %v3811_v47 = vld [vmem:[%s4887_s1 + $0x148] ss:$48 sps:$4 sm:$0xff]   ;;  %v3812_v48 = vld [vmem:[%s4887_s1 + $0x1a4] ss:$48 sps:$4 sm:$0xff]  }
  0x6d   :  { %1729 = vmatprep.mubr.bf16.mxu1 %v3729_v51  ;;  %3281 = vmatpush3.bf16.msra.mxu0 %v3735_v52  ;;  %v3817_v51 = vld [vmem:[%s4887_s1 + $0x1a8] ss:$48 sps:$4 sm:$0xff]   ;;  %v3818_v52 = vld [vmem:[%s4887_s1 + $0x204] ss:$48 sps:$4 sm:$0xff]  }
  0x6e   :  { %3345 = vmatpush3.bf16.msra.mxu1 %v3741_v53  ;;  %3282 = vmatprep.subr.bf16.mxu0 %v3744_v54  ;;  %v3820_v53 = vld [vmem:[%s4887_s1 + $0x20c] ss:$48 sps:$4 sm:$0xff]   ;;  %v3822_v54 = vld [vmem:[%s4887_s1 + $0x200] ss:$48 sps:$4 sm:$0xff]  }
  0x6f   :  { %3346 = vmatprep.subr.bf16.mxu1 %v3746_v57  ;;  %v3826_v57 = vld [vmem:[%s4887_s1 + $0x26c] ss:$48 sps:$4 sm:$0xff]  }
  0x71   :  { %3283 = vmatpush3.bf16.msra.mxu0 %v3745_v55  ;;  %v3823_v55 = vld [vmem:[%s4887_s1 + $0x208] ss:$48 sps:$4 sm:$0xff]  }
  0x72   :  { %3347 = vmatpush3.bf16.msra.mxu1 %v3751_v60  ;;  %3284 = vmatprep.subr.bf16.mxu0 %v3754_v62  ;;  %v3830_v60 = vld [vmem:[%s4887_s1 + $0x2c4] ss:$48 sps:$4 sm:$0xff]   ;;  %v3834_v62 = vld [vmem:[%s4887_s1 + $0x2c0] ss:$48 sps:$4 sm:$0xff]  }
  0x73   :  { %1633 = vmatmul.mubr.bf16.gmra.mrb[40].mxu0 %v3732_v56  ;;  %3348 = vmatprep.subr.bf16.mxu1 %v3756_v0  ;;  %v3824_v56 = vld [vmem:[%s4887_s1 + $0x264] ss:$48 sps:$4 sm:$0xff]  }
  0x74   :  { %1730 = vmatmul.mubr.bf16.gmra.mrb[40].mxu1 %v3733_v58  ;;  %1640 = vmatprep.mubr.bf16.mxu0 %v3737_v59  ;;  %v3828_v58 = vld [vmem:[%s4887_s1 + $0x260] ss:$48 sps:$4 sm:$0xff]   ;;  %v3829_v59 = vld [vmem:[%s4887_s1 + $0x268] ss:$48 sps:$4 sm:$0xff]  }
  0x75   :  { %1737 = vmatprep.mubr.bf16.mxu1 %v3739_v61  ;;  %3285 = vmatpush3.bf16.msra.mxu0 %v3755_v63  ;;  %v3832_v61 = vld [vmem:[%s4887_s1 + $0x2cc] ss:$48 sps:$4 sm:$0xff]   ;;  %v3835_v63 = vld [vmem:[%s4887_s1 + $0x2c8] ss:$48 sps:$4 sm:$0xff]  }
  0x76   :  { %3349 = vmatpush3.bf16.msra.mxu1 %v3761_v4  ;;  %3286 = vmatprep.subr.bf16.mxu0 %v3764_v6 }
  0x77   :  { %3350 = vmatprep.subr.bf16.mxu1 %v3766_v8 }
  0x79   :  { %3287 = vmatpush3.bf16.msra.mxu0 %v3765_v7 }
  0x7a   :  { %3351 = vmatpush3.bf16.msra.mxu1 %v3771_v12  ;;  %3288 = vmatprep.subr.bf16.mxu0 %v3774_v14 }
  0x7b   :  { %1641 = vmatmul.mubr.bf16.gmra.mrb[44].mxu0 %v3742_v1  ;;  %3352 = vmatprep.subr.bf16.mxu1 %v3776_v16 }
  0x7c   :  { %1738 = vmatmul.mubr.bf16.gmra.mrb[44].mxu1 %v3743_v2  ;;  %1648 = vmatprep.mubr.bf16.mxu0 %v3747_v3 }
  0x7d   :  { %1745 = vmatprep.mubr.bf16.mxu1 %v3749_v5  ;;  %3289 = vmatpush3.bf16.msra.mxu0 %v3775_v15 }
  0x7e   :  { %3353 = vmatpush3.bf16.msra.mxu1 %v3781_v17  ;;  %3290 = vmatprep.subr.bf16.mxu0 %v3784_v21 }
  0x7f   :  { %3354 = vmatprep.subr.bf16.mxu1 %v3785_v23 }
  0x81   :  { %3291 = vmatpush3.bf16.msra.mxu0 %v3786_v24 }
  0x82   :  { %3355 = vmatpush3.bf16.msra.mxu1 %v3787_v25 }
  0x83   :  { %1649 = vmatmul.mubr.bf16.gmra.mrb[48].mxu0 %v3752_v9 }
  0x84   :  { %1746 = vmatmul.mubr.bf16.gmra.mrb[48].mxu1 %v3753_v10  ;;  %1656 = vmatprep.mubr.bf16.mxu0 %v3757_v11 }
  0x85   :  { %1753 = vmatprep.mubr.bf16.mxu1 %v3759_v13 }
  0x8b   :  { %1657 = vmatmul.mubr.bf16.gmra.mrb[52].mxu0 %v3762_v18 }
  0x8c   :  { %1754 = vmatmul.mubr.bf16.gmra.mrb[52].mxu1 %v3763_v19  ;;  %1664 = vmatprep.mubr.bf16.mxu0 %v3767_v20 }
  0x8d   :  { %1761 = vmatprep.mubr.bf16.mxu1 %v3769_v22 }
  0x93   :  { %1665 = vmatmul.mubr.bf16.gmra.mrb[56].mxu0 %v3772_v26 }
  0x94   :  { %1762 = vmatmul.mubr.bf16.gmra.mrb[56].mxu1 %v3773_v27  ;;  %1672 = vmatprep.mubr.bf16.mxu0 %v3777_v28 }
  0x95   :  { %1769 = vmatprep.mubr.bf16.mxu1 %v3779_v29 }
  0x9b   :  { %1673 = vmatmul.mubr.bf16.gmra.mrb[60].mxu0 %v3782_v30 }
  0x9c   :  { %1770 = vmatmul.mubr.bf16.gmra.mrb[60].mxu1 %v3783_v31  ;;  %1810 = vmatprep.mubr.bf16.mxu0 %v3790_v32 }
  0x9d   :  { %1907 = vmatprep.mubr.bf16.mxu1 %v3793_v33 }
  0xa3   :  { %1811 = vmatmul.mubr.bf16.vlgmr.msra.gmra.mrb[64].mxu0 %v3788_v34 }
  0xa4   :  { %1908 = vmatmul.mubr.bf16.vlgmr.msra.gmra.mrb[64].mxu1 %v3791_v35  ;;  %1818 = vmatprep.mubr.bf16.mxu0 %v3794_v36 }
  0xa5   :  { %1915 = vmatprep.mubr.bf16.mxu1 %v3796_v37 }
  0xab   :  { %1819 = vmatmul.mubr.bf16.gmra.mrb[68].mxu0 %v3798_v38 }
  0xac   :  { %1916 = vmatmul.mubr.bf16.gmra.mrb[68].mxu1 %v3799_v39  ;;  %1826 = vmatprep.mubr.bf16.mxu0 %v3800_v40 }
  0xad   :  { %1923 = vmatprep.mubr.bf16.mxu1 %v3802_v41 }
  0xb3   :  { %1827 = vmatmul.mubr.bf16.gmra.mrb[72].mxu0 %v3804_v42 }
  0xb4   :  { %1924 = vmatmul.mubr.bf16.gmra.mrb[72].mxu1 %v3805_v43  ;;  %1834 = vmatprep.mubr.bf16.mxu0 %v3806_v44 }
  0xb5   :  { %1931 = vmatprep.mubr.bf16.mxu1 %v3808_v45 }
  0xbb   :  { %1835 = vmatmul.mubr.bf16.gmra.mrb[76].mxu0 %v3810_v46 }
  0xbc   :  { %1932 = vmatmul.mubr.bf16.gmra.mrb[76].mxu1 %v3811_v47  ;;  %1842 = vmatprep.mubr.bf16.mxu0 %v3812_v48 }
  0xbd   :  { %1939 = vmatprep.mubr.bf16.mxu1 %v3814_v49 }
  0xc3   :  { %1843 = vmatmul.mubr.bf16.gmra.mrb[80].mxu0 %v3816_v50 }
  0xc4   :  { %1940 = vmatmul.mubr.bf16.gmra.mrb[80].mxu1 %v3817_v51  ;;  %1850 = vmatprep.mubr.bf16.mxu0 %v3818_v52 }
  0xc5   :  { %1947 = vmatprep.mubr.bf16.mxu1 %v3820_v53 }
  0xcb   :  { %1851 = vmatmul.mubr.bf16.gmra.mrb[84].mxu0 %v3822_v54 }
  0xcc   :  { %1948 = vmatmul.mubr.bf16.gmra.mrb[84].mxu1 %v3823_v55  ;;  %1858 = vmatprep.mubr.bf16.mxu0 %v3824_v56 }
  0xcd   :  { %1955 = vmatprep.mubr.bf16.mxu1 %v3826_v57 }
  0xd3   :  { %1859 = vmatmul.mubr.bf16.gmra.mrb[88].mxu0 %v3828_v58 }
  0xd4   :  { %1956 = vmatmul.mubr.bf16.gmra.mrb[88].mxu1 %v3829_v59  ;;  %1866 = vmatprep.mubr.bf16.mxu0 %v3830_v60 }
  0xd5   :  { %1963 = vmatprep.mubr.bf16.mxu1 %v3832_v61 }
  0xdb   :  { %1867 = vmatmul.mubr.bf16.gmra.mrb[92].mxu0 %v3834_v62 }
  0xdc   :  { %1964 = vmatmul.mubr.bf16.gmra.mrb[92].mxu1 %v3835_v63 }
  0xf6   :  { %v3036_v0 = vpop.f32.mrb[0].mxu0 }
  0xf7   :  { %v3100_v1 = vpop.f32.mrb[0].mxu1  ;;  %v3037_v2 = vpop.f32.mrb[1].mxu0 }
  0xf8   :  { %v3038_v3 = vadd.f32 %v3037_v2, %v3036_v0  ;;  %v3101_v4 = vpop.f32.mrb[1].mxu1  ;;  %v3039_v5 = vpop.f32.mrb[2].mxu0 }
  0xf9   :  { %v3102_v6 = vadd.f32 %v3101_v4, %v3100_v1  ;;  %v3103_v7 = vpop.f32.mrb[2].mxu1  ;;  %v3040_v8 = vpop.f32.mrb[3].mxu0 }
  0xfa   :  { %v3041_v9 = vadd.f32 %v3040_v8, %v3039_v5  ;;  %v3104_v10 = vpop.f32.mrb[3].mxu1 }
  0xfb   :  { %v4545_v11 = vadd.f32 %v3102_v6, %v3038_v3  ;;  %v3105_v12 = vadd.f32 %v3104_v10, %v3103_v7 }
  0xfd   :  { %v4547_v13 = vadd.f32 %v3105_v12, %v3041_v9 }
  0xfe   :  { %v3042_v14 = vpop.f32.mrb[4].mxu0 }
  0xff   :  { %v3106_v15 = vpop.f32.mrb[4].mxu1  ;;  %v3043_v16 = vpop.f32.mrb[5].mxu0 }
 0x100   :  { %v3044_v17 = vadd.f32 %v3043_v16, %v3042_v14  ;;  %v3107_v18 = vpop.f32.mrb[5].mxu1  ;;  %v3045_v19 = vpop.f32.mrb[6].mxu0 }
 0x101   :  { %v3108_v20 = vadd.f32 %v3107_v18, %v3106_v15  ;;  %v3109_v21 = vpop.f32.mrb[6].mxu1  ;;  %v3046_v22 = vpop.f32.mrb[7].mxu0 }
 0x102   :  { %v3047_v23 = vadd.f32 %v3046_v22, %v3045_v19  ;;  %v3110_v24 = vpop.f32.mrb[7].mxu1 }
 0x103   :  { %v4549_v25 = vadd.f32 %v3108_v20, %v3044_v17  ;;  %v3111_v26 = vadd.f32 %v3110_v24, %v3109_v21 }
 0x105   :  { %v4551_v27 = vadd.f32 %v3111_v26, %v3047_v23 }
 0x106   :  { %v3048_v28 = vpop.f32.mrb[8].mxu0 }
 0x107   :  { %v3112_v29 = vpop.f32.mrb[8].mxu1  ;;  %v3049_v30 = vpop.f32.mrb[9].mxu0 }
 0x108   :  { %v3050_v31 = vadd.f32 %v3049_v30, %v3048_v28  ;;  %v3113_v32 = vpop.f32.mrb[9].mxu1  ;;  %v3051_v33 = vpop.f32.mrb[10].mxu0 }
 0x109   :  { %v3114_v34 = vadd.f32 %v3113_v32, %v3112_v29  ;;  %v3115_v35 = vpop.f32.mrb[10].mxu1  ;;  %v3052_v36 = vpop.f32.mrb[11].mxu0 }
 0x10a   :  { %v3053_v37 = vadd.f32 %v3052_v36, %v3051_v33  ;;  %v3116_v38 = vpop.f32.mrb[11].mxu1 }
 0x10b   :  { %v4553_v39 = vadd.f32 %v3114_v34, %v3050_v31  ;;  %v3117_v40 = vadd.f32 %v3116_v38, %v3115_v35 }
 0x10d   :  { %v4555_v41 = vadd.f32 %v3117_v40, %v3053_v37 }
 0x10e   :  { %v3054_v42 = vpop.f32.mrb[12].mxu0 }
 0x10f   :  { %v3118_v43 = vpop.f32.mrb[12].mxu1  ;;  %v3055_v44 = vpop.f32.mrb[13].mxu0 }
 0x110   :  { %v3056_v45 = vadd.f32 %v3055_v44, %v3054_v42  ;;  %v3119_v46 = vpop.f32.mrb[13].mxu1  ;;  %v3057_v47 = vpop.f32.mrb[14].mxu0 }
 0x111   :  { %v3120_v48 = vadd.f32 %v3119_v46, %v3118_v43  ;;  %v3121_v49 = vpop.f32.mrb[14].mxu1  ;;  %v3058_v50 = vpop.f32.mrb[15].mxu0 }
 0x112   :  { %v3059_v51 = vadd.f32 %v3058_v50, %v3057_v47  ;;  %v3122_v52 = vpop.f32.mrb[15].mxu1 }
 0x113   :  { %v4557_v53 = vadd.f32 %v3120_v48, %v3056_v45  ;;  %v3123_v54 = vadd.f32 %v3122_v52, %v3121_v49 }
 0x115   :  { %v4559_v55 = vadd.f32 %v3123_v54, %v3059_v51 }
 0x116   :  { %v3060_v56 = vpop.f32.mrb[16].mxu0 }
 0x117   :  { %v3124_v57 = vpop.f32.mrb[16].mxu1  ;;  %v3061_v58 = vpop.f32.mrb[17].mxu0 }
 0x118   :  { %v3062_v59 = vadd.f32 %v3061_v58, %v3060_v56  ;;  %v3125_v60 = vpop.f32.mrb[17].mxu1  ;;  %v3063_v61 = vpop.f32.mrb[18].mxu0 }
 0x119   :  { %v3126_v62 = vadd.f32 %v3125_v60, %v3124_v57  ;;  %v3127_v63 = vpop.f32.mrb[18].mxu1  ;;  %v3064_v0 = vpop.f32.mrb[19].mxu0 }
 0x11a   :  { %v3065_v1 = vadd.f32 %v3064_v0, %v3063_v61  ;;  %v3128_v2 = vpop.f32.mrb[19].mxu1 }
 0x11b   :  { %v4561_v3 = vadd.f32 %v3126_v62, %v3062_v59  ;;  %v3129_v4 = vadd.f32 %v3128_v2, %v3127_v63 }
 0x11d   :  { %v4563_v5 = vadd.f32 %v3129_v4, %v3065_v1 }
 0x11e   :  { %v3066_v6 = vpop.f32.mrb[20].mxu0 }
 0x11f   :  { %v3130_v7 = vpop.f32.mrb[20].mxu1  ;;  %v3067_v8 = vpop.f32.mrb[21].mxu0 }
 0x120   :  { %v3068_v9 = vadd.f32 %v3067_v8, %v3066_v6  ;;  %v3131_v10 = vpop.f32.mrb[21].mxu1  ;;  %v3069_v12 = vpop.f32.mrb[22].mxu0 }
 0x121   :  { %v3132_v14 = vadd.f32 %v3131_v10, %v3130_v7  ;;  %v3133_v15 = vpop.f32.mrb[22].mxu1  ;;  %v3070_v16 = vpop.f32.mrb[23].mxu0 }
 0x122   :  { %v3071_v17 = vadd.f32 %v3070_v16, %v3069_v12  ;;  %v3134_v18 = vpop.f32.mrb[23].mxu1 }
 0x123   :  { %v4565_v19 = vadd.f32 %v3132_v14, %v3068_v9  ;;  %v3135_v20 = vadd.f32 %v3134_v18, %v3133_v15  ;;  %v4584_v9 = vld [vmem:[%s4888_s0] sm:$0xff]  }
 0x124   :  { %3484 = vmatprep.mubr.bf16.mxu0 %v4584_v9 }
 0x125   :  { %v4567_v21 = vadd.f32 %v3135_v20, %v3071_v17 }
 0x126   :  { %v3072_v22 = vpop.f32.mrb[24].mxu0 }
 0x127   :  { %v3136_v23 = vpop.f32.mrb[24].mxu1  ;;  %v3073_v24 = vpop.f32.mrb[25].mxu0 }
 0x128   :  { %v3074_v26 = vadd.f32 %v3073_v24, %v3072_v22  ;;  %v3137_v28 = vpop.f32.mrb[25].mxu1  ;;  %v3075_v29 = vpop.f32.mrb[26].mxu0 }
 0x129   :  { %v3138_v30 = vadd.f32 %v3137_v28, %v3136_v23  ;;  %v3139_v31 = vpop.f32.mrb[26].mxu1  ;;  %v3076_v32 = vpop.f32.mrb[27].mxu0 }
 0x12a   :  { %v3077_v33 = vadd.f32 %v3076_v32, %v3075_v29  ;;  %v3140_v34 = vpop.f32.mrb[27].mxu1 }
 0x12b   :  { %v4569_v35 = vadd.f32 %v3138_v30, %v3074_v26  ;;  %v3141_v36 = vadd.f32 %v3140_v34, %v3139_v31 }
 0x12d   :  { %v4571_v37 = vadd.f32 %v3141_v36, %v3077_v33 }
 0x12e   :  { %v3078_v38 = vpop.f32.mrb[28].mxu0 }
 0x12f   :  { %v3142_v40 = vpop.f32.mrb[28].mxu1  ;;  %v3079_v42 = vpop.f32.mrb[29].mxu0 }
 0x130   :  { %v3080_v43 = vadd.f32 %v3079_v42, %v3078_v38  ;;  %v3143_v44 = vpop.f32.mrb[29].mxu1  ;;  %v3081_v45 = vpop.f32.mrb[30].mxu0 }
 0x131   :  { %v3144_v46 = vadd.f32 %v3143_v44, %v3142_v40  ;;  %v3145_v47 = vpop.f32.mrb[30].mxu1  ;;  %v3082_v48 = vpop.f32.mrb[31].mxu0 }
 0x132   :  { %v3083_v49 = vadd.f32 %v3082_v48, %v3081_v45  ;;  %v3146_v50 = vpop.f32.mrb[31].mxu1 }
 0x133   :  { %v4573_v51 = vadd.f32 %v3144_v46, %v3080_v43  ;;  %v3147_v52 = vadd.f32 %v3146_v50, %v3145_v47 }
 0x135   :  { %v4575_v54 = vadd.f32 %v3147_v52, %v3083_v49 }
 0x136   :  { %v3164_v56 = vpop.f32.mrb[32].mxu0 }
 0x137   :  { %v3228_v57 = vpop.f32.mrb[32].mxu1  ;;  %v3165_v58 = vpop.f32.mrb[33].mxu0 }
 0x138   :  { %v3166_v59 = vadd.f32 %v3165_v58, %v3164_v56  ;;  %v3229_v60 = vpop.f32.mrb[33].mxu1  ;;  %v3167_v61 = vpop.f32.mrb[34].mxu0 }
 0x139   :  { %v3230_v62 = vadd.f32 %v3229_v60, %v3228_v57  ;;  %v3231_v63 = vpop.f32.mrb[34].mxu1  ;;  %v3168_v0 = vpop.f32.mrb[35].mxu0 }
 0x13a   :  { %v1619_v1 = vadd.f32 %v3166_v59, %v4545_v11  ;;  %v3169_v2 = vadd.f32 %v3168_v0, %v3167_v61  ;;  %v3232_v4 = vpop.f32.mrb[35].mxu1 }
 0x13b   :  { %v3233_v6 = vadd.f32 %v3232_v4, %v3231_v63 }
 0x13c   :  { %v4578_v7 = vadd.f32 %v3230_v62, %v1619_v1  ;;  %v1622_v8 = vadd.f32 %v3169_v2, %v4547_v13 }
 0x13e   :  { %v4586_v10 = vadd.f32 %v3233_v6, %v1622_v8  ;;  %v3170_v12 = vpop.f32.mrb[36].mxu0 }
 0x13f   :  { %v3234_v14 = vpop.f32.mrb[36].mxu1  ;;  %v3171_v15 = vpop.f32.mrb[37].mxu0 }
 0x140   :  { %v3172_v11 = vadd.f32 %v3171_v15, %v3170_v12  ;;  %v3235_v16 = vpop.f32.mrb[37].mxu1  ;;  %v3173_v17 = vpop.f32.mrb[38].mxu0 }
 0x141   :  { %v3236_v18 = vadd.f32 %v3235_v16, %v3234_v14  ;;  %v3237_v20 = vpop.f32.mrb[38].mxu1  ;;  %v3174_v22 = vpop.f32.mrb[39].mxu0 }
 0x142   :  { %v1627_v13 = vadd.f32 %v3172_v11, %v4549_v25  ;;  %v3175_v23 = vadd.f32 %v3174_v22, %v3173_v17  ;;  %v3238_v24 = vpop.f32.mrb[39].mxu1  ;;  %v3844_v11 = vld [vmem:[%s4889_s4] sm:$0xff]  }
 0x143   :  { %v3239_v26 = vadd.f32 %v3238_v24, %v3237_v20  ;;  %3500 = vmatprep.subr.bf16.mxu1 %v3844_v11 }
 0x144   :  { %v4590_v28 = vadd.f32 %v3236_v18, %v1627_v13  ;;  %v1630_v29 = vadd.f32 %v3175_v23, %v4551_v27  ;;  %3501 = vmatpush3.bf16.msra.mxu1 %v3844_v11 }
 0x146   :  { %v4593_v30 = vadd.f32 %v3239_v26, %v1630_v29  ;;  %v3176_v31 = vpop.f32.mrb[40].mxu0  ;;  %v3846_v26 = vld [vmem:[%s4889_s4 + $0x10] sm:$0xff]  }
 0x147   :  { %v3240_v32 = vpop.f32.mrb[40].mxu1  ;;  %v3177_v33 = vpop.f32.mrb[41].mxu0 }
 0x148   :  { %v3178_v34 = vadd.f32 %v3177_v33, %v3176_v31  ;;  %v3241_v36 = vpop.f32.mrb[41].mxu1  ;;  %v3179_v38 = vpop.f32.mrb[42].mxu0 }
 0x149   :  { %v3242_v40 = vadd.f32 %v3241_v36, %v3240_v32  ;;  %v3243_v42 = vpop.f32.mrb[42].mxu1  ;;  %v3180_v43 = vpop.f32.mrb[43].mxu0 }
 0x14a   :  { %v1635_v25 = vadd.f32 %v3178_v34, %v4553_v39  ;;  %v3181_v44 = vadd.f32 %v3180_v43, %v3179_v38  ;;  %v3244_v45 = vpop.f32.mrb[43].mxu1  ;;  %v3847_v38 = vld [vmem:[%s4889_s4 + $0x18] sm:$0xff]  }
 0x14b   :  { %v3245_v46 = vadd.f32 %v3244_v45, %v3243_v42 }
 0x14c   :  { %v4596_v47 = vadd.f32 %v3242_v40, %v1635_v25  ;;  %v1638_v27 = vadd.f32 %v3181_v44, %v4555_v41 }
 0x14e   :  { %v4599_v48 = vadd.f32 %v3245_v46, %v1638_v27  ;;  %v3182_v49 = vpop.f32.mrb[44].mxu0 }
 0x14f   :  { %v3246_v50 = vpop.f32.mrb[44].mxu1  ;;  %v3183_v52 = vpop.f32.mrb[45].mxu0 }
 0x150   :  { %v3184_v56 = vadd.f32 %v3183_v52, %v3182_v49  ;;  %v3247_v57 = vpop.f32.mrb[45].mxu1  ;;  %v3185_v58 = vpop.f32.mrb[46].mxu0  ;;  %v3848_v49 = vld [vmem:[%s4889_s4 + $0x20] sm:$0xff]  }
 0x151   :  { %v3248_v59 = vadd.f32 %v3247_v57, %v3246_v50  ;;  %v3249_v60 = vpop.f32.mrb[46].mxu1  ;;  %v3186_v61 = vpop.f32.mrb[47].mxu0 }
 0x152   :  { %v1643_v39 = vadd.f32 %v3184_v56, %v4557_v53  ;;  %v3187_v62 = vadd.f32 %v3186_v61, %v3185_v58  ;;  %v3250_v63 = vpop.f32.mrb[47].mxu1  ;;  %v3845_v53 = vld [vmem:[%s4889_s4 + $0x8] sm:$0xff]  }
 0x153   :  { %v3251_v0 = vadd.f32 %v3250_v63, %v3249_v60  ;;  %3502 = vmatprep.subr.bf16.mxu1 %v3845_v53  ;;  %v3849_v60 = vld [vmem:[%s4889_s4 + $0x28] sm:$0xff]  }
 0x154   :  { %v4602_v1 = vadd.f32 %v3248_v59, %v1643_v39  ;;  %v1646_v41 = vadd.f32 %v3187_v62, %v4559_v55  ;;  %3503 = vmatpush3.bf16.msra.mxu1 %v3845_v53 }
 0x155   :  { %3504 = vmatprep.subr.bf16.mxu1 %v3846_v26 }
 0x156   :  { %v4605_v2 = vadd.f32 %v3251_v0, %v1646_v41  ;;  %v3188_v4 = vpop.f32.mrb[48].mxu0 }
 0x157   :  { %v3252_v6 = vpop.f32.mrb[48].mxu1  ;;  %v3189_v8 = vpop.f32.mrb[49].mxu0 }
 0x158   :  { %v3190_v12 = vadd.f32 %v3189_v8, %v3188_v4  ;;  %v3253_v14 = vpop.f32.mrb[49].mxu1  ;;  %v3191_v15 = vpop.f32.mrb[50].mxu0  ;;  %3505 = vmatpush3.bf16.msra.mxu1 %v3846_v26  ;;  %v3850_v8 = vld [vmem:[%s4889_s4 + $0x30] sm:$0xff]  }
 0x159   :  { %v3254_v16 = vadd.f32 %v3253_v14, %v3252_v6  ;;  %v3255_v17 = vpop.f32.mrb[50].mxu1  ;;  %v3192_v18 = vpop.f32.mrb[51].mxu0  ;;  %3506 = vmatprep.subr.bf16.mxu1 %v3847_v38 }
 0x15a   :  { %v1651_v55 = vadd.f32 %v3190_v12, %v4561_v3  ;;  %v3193_v20 = vadd.f32 %v3192_v18, %v3191_v15  ;;  %v3256_v22 = vpop.f32.mrb[51].mxu1 }
 0x15b   :  { %v3257_v13 = vadd.f32 %v3256_v22, %v3255_v17 }
 0x15c   :  { %v4614_v23 = vadd.f32 %v3254_v16, %v1651_v55  ;;  %v1654_v24 = vadd.f32 %v3193_v20, %v4563_v5  ;;  %3507 = vmatpush3.bf16.msra.mxu1 %v3847_v38 }
 0x15d   :  { %3508 = vmatprep.subr.bf16.mxu1 %v3848_v49 }
 0x15e   :  { %v4620_v29 = vadd.f32 %v3257_v13, %v1654_v24  ;;  %v3194_v31 = vpop.f32.mrb[52].mxu0 }
 0x15f   :  { %v3258_v32 = vpop.f32.mrb[52].mxu1  ;;  %v3195_v33 = vpop.f32.mrb[53].mxu0 }
 0x160   :  { %v3196_v3 = vadd.f32 %v3195_v33, %v3194_v31  ;;  %v3259_v34 = vpop.f32.mrb[53].mxu1  ;;  %v3197_v36 = vpop.f32.mrb[54].mxu0  ;;  %3509 = vmatpush3.bf16.msra.mxu1 %v3848_v49 }
 0x161   :  { %v3260_v5 = vadd.f32 %v3259_v34, %v3258_v32  ;;  %v3261_v40 = vpop.f32.mrb[54].mxu1  ;;  %v3198_v42 = vpop.f32.mrb[55].mxu0  ;;  %3510 = vmatprep.subr.bf16.mxu1 %v3849_v60 }
 0x162   :  { %v1659_v43 = vadd.f32 %v3196_v3, %v4565_v19  ;;  %v3199_v25 = vadd.f32 %v3198_v42, %v3197_v36  ;;  %v3262_v44 = vpop.f32.mrb[55].mxu1 }
 0x163   :  { %v3263_v45 = vadd.f32 %v3262_v44, %v3261_v40 }
 0x164   :  { %v4626_v46 = vadd.f32 %v3260_v5, %v1659_v43  ;;  %v1662_v27 = vadd.f32 %v3199_v25, %v4567_v21  ;;  %3511 = vmatpush3.bf16.msra.mxu1 %v3849_v60 }
 0x165   :  { %3512 = vmatprep.subr.bf16.mxu1 %v3850_v8 }
 0x166   :  { %v4632_v50 = vadd.f32 %v3263_v45, %v1662_v27  ;;  %v3200_v52 = vpop.f32.mrb[56].mxu0 }
 0x167   :  { %v3264_v56 = vpop.f32.mrb[56].mxu1  ;;  %v3201_v57 = vpop.f32.mrb[57].mxu0 }
 0x168   :  { %v3202_v19 = vadd.f32 %v3201_v57, %v3200_v52  ;;  %v3265_v58 = vpop.f32.mrb[57].mxu1  ;;  %v3203_v59 = vpop.f32.mrb[58].mxu0  ;;  %3513 = vmatpush3.bf16.msra.mxu1 %v3850_v8 }
 0x169   :  { %v3266_v21 = vadd.f32 %v3265_v58, %v3264_v56  ;;  %v3267_v61 = vpop.f32.mrb[58].mxu1  ;;  %v3204_v39 = vpop.f32.mrb[59].mxu0 }
 0x16a   :  { %v1667_v62 = vadd.f32 %v3202_v19, %v4569_v35  ;;  %v3205_v63 = vadd.f32 %v3204_v39, %v3203_v59  ;;  %v3268_v0 = vpop.f32.mrb[59].mxu1 }
 0x16b   :  { %v3269_v41 = vadd.f32 %v3268_v0, %v3267_v61 }
 0x16c   :  { %v4638_v4 = vadd.f32 %v3266_v21, %v1667_v62  ;;  %v1670_v6 = vadd.f32 %v3205_v63, %v4571_v37 }
 0x16e   :  { %v4644_v12 = vadd.f32 %v3269_v41, %v1670_v6  ;;  %v3206_v14 = vpop.f32.mrb[60].mxu0 }
 0x16f   :  { %v3270_v15 = vpop.f32.mrb[60].mxu1  ;;  %v3207_v11 = vpop.f32.mrb[61].mxu0 }
 0x170   :  { %v3208_v35 = vadd.f32 %v3207_v11, %v3206_v14  ;;  %v3271_v53 = vpop.f32.mrb[61].mxu1  ;;  %v3209_v16 = vpop.f32.mrb[62].mxu0 }
 0x171   :  { %v3272_v17 = vadd.f32 %v3271_v53, %v3270_v15  ;;  %v3273_v18 = vpop.f32.mrb[62].mxu1  ;;  %v3210_v55 = vpop.f32.mrb[63].mxu0 }
 0x172   :  { %v1675_v37 = vadd.f32 %v3208_v35, %v4573_v51  ;;  %v3211_v20 = vadd.f32 %v3210_v55, %v3209_v16  ;;  %v3274_v22 = vpop.f32.mrb[63].mxu1 }
 0x173   :  { %v3275_v13 = vadd.f32 %v3274_v22, %v3273_v18 }
 0x174   :  { %v4647_v24 = vadd.f32 %v3272_v17, %v1675_v37  ;;  %v1678_v26 = vadd.f32 %v3211_v20, %v4575_v54 }
 0x176   :  { %v4650_v31 = vadd.f32 %v3275_v13, %v1678_v26  ;;  %v3292_v32 = vpop.f32.mrb[64].mxu0 }
 0x177   :  { %v3356_v33 = vpop.f32.mrb[64].mxu1  ;;  %v3293_v3 = vpop.f32.mrb[65].mxu0 }
 0x178   :  { %v3294_v34 = vadd.f32 %v3293_v3, %v3292_v32  ;;  %v3357_v36 = vpop.f32.mrb[65].mxu1  ;;  %v3295_v38 = vpop.f32.mrb[66].mxu0 }
 0x179   :  { %v3358_v5 = vadd.f32 %v3357_v36, %v3356_v33  ;;  %v3359_v40 = vpop.f32.mrb[66].mxu1  ;;  %v3296_v42 = vpop.f32.mrb[67].mxu0 }
 0x17a   :  { %v1813_v51 = vadd.f32 %v3294_v34, %v4578_v7  ;;  %v3297_v43 = vadd.f32 %v3296_v42, %v3295_v38  ;;  %v3360_v25 = vpop.f32.mrb[67].mxu1 }
 0x17b   :  { %v3361_v44 = vadd.f32 %v3360_v25, %v3359_v40 }
 0x17c   :  { %v1910_v45 = vadd.f32 %v3358_v5, %v1813_v51  ;;  %v1816_v27 = vadd.f32 %v3297_v43, %v4586_v10 }
 0x17e   :  { %v1913_v54 = vadd.f32 %v3361_v44, %v1816_v27  ;;  %v3298_v49 = vpop.f32.mrb[68].mxu0 }
 0x17f   :  { %v3362_v52 = vpop.f32.mrb[68].mxu1  ;;  %v3299_v56 = vpop.f32.mrb[69].mxu0 }
 0x180   :  { %v3300_v57 = vadd.f32 %v3299_v56, %v3298_v49  ;;  %v3363_v19 = vpop.f32.mrb[69].mxu1  ;;  %v3301_v58 = vpop.f32.mrb[70].mxu0  ;;  %v1972_v59 = vpack.c.bf16 %v1913_v54, %v1910_v45 }
 0x181   :  { %v3364_v60 = vadd.f32 %v3363_v19, %v3362_v52  ;;  %v3365_v21 = vpop.f32.mrb[70].mxu1  ;;  %v3302_v61 = vpop.f32.mrb[71].mxu0 }
 0x182   :  { %v1821_v39 = vadd.f32 %v3300_v57, %v4590_v28  ;;  %v3303_v7 = vadd.f32 %v3302_v61, %v3301_v58  ;;  %v3366_v62 = vpop.f32.mrb[71].mxu1  ;;  %3468 = vmatprep.subr.bf16.mxu0 %v1972_v59 }
 0x183   :  { %v3367_v63 = vadd.f32 %v3366_v62, %v3365_v21  ;;  %3469 = vmatpush3.bf16.msra.mxu0 %v1972_v59 }
 0x184   :  { %v1918_v0 = vadd.f32 %v3364_v60, %v1821_v39  ;;  %v1824_v10 = vadd.f32 %v3303_v7, %v4593_v30 }
 0x186   :  { %v1921_v41 = vadd.f32 %v3367_v63, %v1824_v10  ;;  %v3304_v6 = vpop.f32.mrb[72].mxu0 }
 0x187   :  { %v3368_v8 = vpop.f32.mrb[72].mxu1  ;;  %v3305_v14 = vpop.f32.mrb[73].mxu0 }
 0x188   :  { %v3306_v15 = vadd.f32 %v3305_v14, %v3304_v6  ;;  %v3369_v11 = vpop.f32.mrb[73].mxu1  ;;  %v3307_v35 = vpop.f32.mrb[74].mxu0  ;;  %v1973_v53 = vpack.c.bf16 %v1921_v41, %v1918_v0 }
 0x189   :  { %v3370_v16 = vadd.f32 %v3369_v11, %v3368_v8  ;;  %v3371_v17 = vpop.f32.mrb[74].mxu1  ;;  %v3308_v18 = vpop.f32.mrb[75].mxu0 }
 0x18a   :  { %v1829_v28 = vadd.f32 %v3306_v15, %v4596_v47  ;;  %v3309_v55 = vadd.f32 %v3308_v18, %v3307_v35  ;;  %v3372_v37 = vpop.f32.mrb[75].mxu1  ;;  %3470 = vmatprep.subr.bf16.mxu0 %v1973_v53 }
 0x18b   :  { %v3373_v20 = vadd.f32 %v3372_v37, %v3371_v17  ;;  %3471 = vmatpush3.bf16.msra.mxu0 %v1973_v53 }
 0x18c   :  { %v1926_v22 = vadd.f32 %v3370_v16, %v1829_v28  ;;  %v1832_v30 = vadd.f32 %v3309_v55, %v4599_v48 }
 0x18e   :  { %v1929_v13 = vadd.f32 %v3373_v20, %v1832_v30  ;;  %v3310_v26 = vpop.f32.mrb[76].mxu0 }
 0x18f   :  { %v3374_v32 = vpop.f32.mrb[76].mxu1  ;;  %v3311_v33 = vpop.f32.mrb[77].mxu0 }
 0x190   :  { %v3312_v3 = vadd.f32 %v3311_v33, %v3310_v26  ;;  %v3375_v34 = vpop.f32.mrb[77].mxu1  ;;  %v3313_v36 = vpop.f32.mrb[78].mxu0  ;;  %v1974_v38 = vpack.c.bf16 %v1929_v13, %v1926_v22 }
 0x191   :  { %v3376_v5 = vadd.f32 %v3375_v34, %v3374_v32  ;;  %v3377_v40 = vpop.f32.mrb[78].mxu1  ;;  %v3314_v42 = vpop.f32.mrb[79].mxu0 }
 0x192   :  { %v1837_v47 = vadd.f32 %v3312_v3, %v4602_v1  ;;  %v3315_v51 = vadd.f32 %v3314_v42, %v3313_v36  ;;  %v3378_v43 = vpop.f32.mrb[79].mxu1  ;;  %3472 = vmatprep.subr.bf16.mxu0 %v1974_v38 }
 0x193   :  { %v3379_v25 = vadd.f32 %v3378_v43, %v3377_v40  ;;  %3473 = vmatpush3.bf16.msra.mxu0 %v1974_v38 }
 0x194   :  { %v1934_v44 = vadd.f32 %v3376_v5, %v1837_v47  ;;  %v1840_v48 = vadd.f32 %v3315_v51, %v4605_v2 }
 0x196   :  { %v1937_v45 = vadd.f32 %v3379_v25, %v1840_v48  ;;  %v3316_v27 = vpop.f32.mrb[80].mxu0 }
 0x197   :  { %v3380_v54 = vpop.f32.mrb[80].mxu1  ;;  %v3317_v49 = vpop.f32.mrb[81].mxu0 }
 0x198   :  { %v3318_v52 = vadd.f32 %v3317_v49, %v3316_v27  ;;  %v3381_v56 = vpop.f32.mrb[81].mxu1  ;;  %v3319_v57 = vpop.f32.mrb[82].mxu0  ;;  %v1975_v19 = vpack.c.bf16 %v1937_v45, %v1934_v44 }
 0x199   :  { %v3382_v58 = vadd.f32 %v3381_v56, %v3380_v54  ;;  %v3383_v59 = vpop.f32.mrb[82].mxu1  ;;  %v3320_v60 = vpop.f32.mrb[83].mxu0 }
 0x19a   :  { %v1845_v1 = vadd.f32 %v3318_v52, %v4614_v23  ;;  %v3321_v21 = vadd.f32 %v3320_v60, %v3319_v57  ;;  %v3384_v61 = vpop.f32.mrb[83].mxu1  ;;  %3474 = vmatprep.subr.bf16.mxu0 %v1975_v19  ;;  %v4688_v60 = vld [vmem:[%s4888_s0 + $0x20] sm:$0xff]  }
 0x19b   :  { %v3385_v39 = vadd.f32 %v3384_v61, %v3383_v59  ;;  %3475 = vmatpush3.bf16.msra.mxu0 %v1975_v19  ;;  %v4671_v59 = vld [vmem:[%s4888_s0 + $0x8] sm:$0xff]   ;;  %v4707_v61 = vld [vmem:[%s4888_s0 + $0x38] sm:$0xff]  }
 0x19c   :  { %v1942_v7 = vadd.f32 %v3382_v58, %v1845_v1  ;;  %v1848_v2 = vadd.f32 %v3321_v21, %v4620_v29  ;;  %v4695_v1 = vld [vmem:[%s4888_s0 + $0x28] sm:$0xff]   ;;  %v4700_v21 = vld [vmem:[%s4888_s0 + $0x30] sm:$0xff]  }
 0x19e   :  { %v1945_v62 = vadd.f32 %v3385_v39, %v1848_v2  ;;  %v3322_v63 = vpop.f32.mrb[84].mxu0  ;;  %v3851_v39 = vld [vmem:[%s4889_s4 + $0x38] sm:$0xff]  }
 0x19f   :  { %v3386_v0 = vpop.f32.mrb[84].mxu1  ;;  %v3323_v10 = vpop.f32.mrb[85].mxu0  ;;  %3514 = vmatprep.subr.bf16.mxu1 %v3851_v39 }
 0x1a0   :  { %v3324_v41 = vadd.f32 %v3323_v10, %v3322_v63  ;;  %v3387_v6 = vpop.f32.mrb[85].mxu1  ;;  %v3325_v8 = vpop.f32.mrb[86].mxu0  ;;  %v1976_v14 = vpack.c.bf16 %v1945_v62, %v1942_v7  ;;  %3515 = vmatpush3.bf16.msra.mxu1 %v3851_v39  ;;  %v2993_v7 = vld [vmem:[%s4890_s3] ss:$0 sm:$0xff] }
 0x1a1   :  { %v3388_v15 = vadd.f32 %v3387_v6, %v3386_v0  ;;  %v3389_v11 = vpop.f32.mrb[86].mxu1  ;;  %v3326_v35 = vpop.f32.mrb[87].mxu0 }
 0x1a2   :  { %v1853_v23 = vadd.f32 %v3324_v41, %v4626_v46  ;;  %v3327_v53 = vadd.f32 %v3326_v35, %v3325_v8  ;;  %v3390_v16 = vpop.f32.mrb[87].mxu1  ;;  %3476 = vmatprep.subr.bf16.mxu0 %v1976_v14 }
 0x1a3   :  { %v3391_v17 = vadd.f32 %v3390_v16, %v3389_v11  ;;  %3477 = vmatpush3.bf16.msra.mxu0 %v1976_v14 }
 0x1a4   :  { %v1950_v18 = vadd.f32 %v3388_v15, %v1853_v23  ;;  %v1856_v29 = vadd.f32 %v3327_v53, %v4632_v50 }
 0x1a6   :  { %v1953_v28 = vadd.f32 %v3391_v17, %v1856_v29  ;;  %v3328_v55 = vpop.f32.mrb[88].mxu0 }
 0x1a7   :  { %v3392_v37 = vpop.f32.mrb[88].mxu1  ;;  %v3329_v20 = vpop.f32.mrb[89].mxu0 }
 0x1a8   :  { %v3330_v22 = vadd.f32 %v3329_v20, %v3328_v55  ;;  %v3393_v30 = vpop.f32.mrb[89].mxu1  ;;  %v3331_v13 = vpop.f32.mrb[90].mxu0  ;;  %v1977_v26 = vpack.c.bf16 %v1953_v28, %v1950_v18 }
 0x1a9   :  { %v3394_v32 = vadd.f32 %v3393_v30, %v3392_v37  ;;  %v3395_v33 = vpop.f32.mrb[90].mxu1  ;;  %v3332_v3 = vpop.f32.mrb[91].mxu0 }
 0x1aa   :  { %v1861_v46 = vadd.f32 %v3330_v22, %v4638_v4  ;;  %v3333_v34 = vadd.f32 %v3332_v3, %v3331_v13  ;;  %v3396_v36 = vpop.f32.mrb[91].mxu1  ;;  %3478 = vmatprep.subr.bf16.mxu0 %v1977_v26 }
 0x1ab   :  { %v3397_v38 = vadd.f32 %v3396_v36, %v3395_v33  ;;  %3479 = vmatpush3.bf16.msra.mxu0 %v1977_v26 }
 0x1ac   :  { %v1958_v5 = vadd.f32 %v3394_v32, %v1861_v46  ;;  %v1864_v50 = vadd.f32 %v3333_v34, %v4644_v12 }
 0x1ae   :  { %v1961_v40 = vadd.f32 %v3397_v38, %v1864_v50  ;;  %v3334_v42 = vpop.f32.mrb[92].mxu0 }
 0x1af   :  { %v3398_v47 = vpop.f32.mrb[92].mxu1  ;;  %v3335_v51 = vpop.f32.mrb[93].mxu0 }
 0x1b0   :  { %v3336_v43 = vadd.f32 %v3335_v51, %v3334_v42  ;;  %v3399_v25 = vpop.f32.mrb[93].mxu1  ;;  %v3337_v44 = vpop.f32.mrb[94].mxu0  ;;  %v1978_v48 = vpack.c.bf16 %v1961_v40, %v1958_v5 }
 0x1b1   :  { %v3400_v45 = vadd.f32 %v3399_v25, %v3398_v47  ;;  %v3401_v27 = vpop.f32.mrb[94].mxu1  ;;  %v3338_v54 = vpop.f32.mrb[95].mxu0 }
 0x1b2   :  { %v1869_v4 = vadd.f32 %v3336_v43, %v4647_v24  ;;  %v3339_v49 = vadd.f32 %v3338_v54, %v3337_v44  ;;  %v3402_v52 = vpop.f32.mrb[95].mxu1  ;;  %3480 = vmatprep.subr.bf16.mxu0 %v1978_v48  ;;  %v4676_v24 = vld [vmem:[%s4888_s0 + $0x10] sm:$0xff]  }
 0x1b3   :  { %v3403_v56 = vadd.f32 %v3402_v52, %v3401_v27  ;;  %3481 = vmatpush3.bf16.msra.mxu0 %v1978_v48 }
 0x1b4   :  { %v1966_v57 = vadd.f32 %v3400_v45, %v1869_v4  ;;  %v1872_v12 = vadd.f32 %v3339_v49, %v4650_v31  ;;  %v4683_v31 = vld [vmem:[%s4888_s0 + $0x18] sm:$0xff]  }
 0x1b6   :  { %v1969_v19 = vadd.f32 %v3403_v56, %v1872_v12 }
 0x1b8   :  { %v1979_v58 = vpack.c.bf16 %v1969_v19, %v1966_v57 }
 0x1ba   :  { %3482 = vmatprep.subr.bf16.mxu0 %v1979_v58 }
 0x1bb   :  { %3483 = vmatpush3.bf16.msra.mxu0 %v1979_v58 }
 0x1be   :  { %3485 = vmatmul.mubr.bf16.vlgmr.msra.gmra.mrb[96].mxu0 %v4671_v59 }
 0x1bf   :  { %3488 = vmatprep.mubr.bf16.mxu0 %v4676_v24 }
 0x1c6   :  { %3489 = vmatmul.mubr.bf16.gmra.mrb[100].mxu0 %v4683_v31 }
 0x1c7   :  { %3492 = vmatprep.mubr.bf16.mxu0 %v4688_v60 }
 0x1ce   :  { %3493 = vmatmul.mubr.bf16.gmra.mrb[104].mxu0 %v4695_v1 }
 0x1cf   :  { %3496 = vmatprep.mubr.bf16.mxu0 %v4700_v21 }
 0x1d6   :  { %3497 = vmatmul.mubr.bf16.gmra.mrb[108].mxu0 %v4707_v61 }
 0x1d7   :  { %3548 = vmatprep.mubr.bf16.mxu0 %v4584_v9 }
 0x291   :  { %v3486_v2 = vpop.f32.mrb[96].mxu0 }
 0x292   :  { %v2078_v62 = vadd.f32 %v3486_v2, %v2993_v7  ;;  %v2069_v63 = vpop.f32.mrb[97].mxu0  ;;  %v3852_v2 = vld [vmem:[%s4891_s6] sm:$0xff]  }
 0x293   :  { %v2070_v0 = vadd.f32 %v2993_v7, %v2069_v63  ;;  %v3487_v10 = vpop.f32.mrb[98].mxu0  ;;  %3564 = vmatprep.subr.bf16.mxu1 %v3852_v2  ;;  %v3855_v63 = vld [vmem:[%s4891_s6 + $0x18] sm:$0xff]  }
 0x294   :  { %v2081_v41 = vadd.f32 %v3487_v10, %v2993_v7  ;;  %v2072_v6 = vpop.f32.mrb[99].mxu0  ;;  %v2134_v14 = vmax.f32 %v2078_v62, 0.0  ;;  %v3853_v62 = vld [vmem:[%s4891_s6 + $0x8] sm:$0xff]  }
 0x295   :  { %v2073_v8 = vadd.f32 %v2993_v7, %v2072_v6  ;;  %v2132_v15 = vmax.f32 %v2070_v0, 0.0  ;;  %v3856_v0 = vld [vmem:[%s4891_s6 + $0x20] sm:$0xff]   ;;  %v3857_v10 = vld [vmem:[%s4891_s6 + $0x28] sm:$0xff]  }
 0x296   :  { %v2135_v9 = vmax.f32 %v2081_v41, 0.0 }
 0x297   :  { %v2133_v11 = vmax.f32 %v2073_v8, 0.0 }
 0x298   :  { %v2149_v35 = vpack.c.bf16 %v2135_v9, %v2134_v14 }
 0x299   :  { %v2148_v23 = vpack.c.bf16 %v2133_v11, %v2132_v15  ;;  %v3490_v53 = vpop.f32.mrb[100].mxu0 }
 0x29a   :  { %v2094_v16 = vadd.f32 %v3490_v53, %v2993_v7  ;;  %v2085_v17 = vpop.f32.mrb[101].mxu0 }
 0x29b   :  { %v2086_v18 = vadd.f32 %v2993_v7, %v2085_v17  ;;  %v3491_v29 = vpop.f32.mrb[102].mxu0  ;;  %3516 = vmatprep.mubr.bf16.mxu1 %v2148_v23 }
 0x29c   :  { %v2097_v28 = vadd.f32 %v3491_v29, %v2993_v7  ;;  %v2088_v55 = vpop.f32.mrb[103].mxu0  ;;  %3517 = vmatmul.mubr.bf16.vlgmr.msra.gmra.mrb[96].mxu1 %v2149_v35  ;;  %v2138_v20 = vmax.f32 %v2094_v16, 0.0 }
 0x29d   :  { %v2089_v37 = vadd.f32 %v2993_v7, %v2088_v55  ;;  %v2136_v30 = vmax.f32 %v2086_v18, 0.0  ;;  %3565 = vmatpush3.bf16.msra.mxu1 %v3852_v2 }
 0x29e   :  { %v2139_v22 = vmax.f32 %v2097_v28, 0.0  ;;  %3566 = vmatprep.subr.bf16.mxu1 %v3853_v62 }
 0x29f   :  { %v2137_v13 = vmax.f32 %v2089_v37, 0.0 }
 0x2a0   :  { %v2151_v26 = vpack.c.bf16 %v2139_v22, %v2138_v20 }
 0x2a1   :  { %v2150_v32 = vpack.c.bf16 %v2137_v13, %v2136_v30  ;;  %v3494_v33 = vpop.f32.mrb[104].mxu0  ;;  %3567 = vmatpush3.bf16.msra.mxu1 %v3853_v62 }
 0x2a2   :  { %v2110_v3 = vadd.f32 %v3494_v33, %v2993_v7  ;;  %v2101_v46 = vpop.f32.mrb[105].mxu0 }
 0x2a3   :  { %v2102_v34 = vadd.f32 %v2993_v7, %v2101_v46  ;;  %v3495_v36 = vpop.f32.mrb[106].mxu0  ;;  %3520 = vmatprep.mubr.bf16.mxu1 %v2150_v32 }
 0x2a4   :  { %v2113_v38 = vadd.f32 %v3495_v36, %v2993_v7  ;;  %v2104_v5 = vpop.f32.mrb[107].mxu0  ;;  %3521 = vmatmul.mubr.bf16.gmra.mrb[100].mxu1 %v2151_v26  ;;  %v2142_v40 = vmax.f32 %v2110_v3, 0.0  ;;  %v3858_v3 = vld [vmem:[%s4891_s6 + $0x30] sm:$0xff]  }
 0x2a5   :  { %v2105_v50 = vadd.f32 %v2993_v7, %v2104_v5  ;;  %v2140_v47 = vmax.f32 %v2102_v34, 0.0 }
 0x2a6   :  { %v2143_v42 = vmax.f32 %v2113_v38, 0.0 }
 0x2a7   :  { %v2141_v51 = vmax.f32 %v2105_v50, 0.0 }
 0x2a8   :  { %v2153_v43 = vpack.c.bf16 %v2143_v42, %v2142_v40 }
 0x2a9   :  { %v2152_v25 = vpack.c.bf16 %v2141_v51, %v2140_v47  ;;  %v3498_v44 = vpop.f32.mrb[108].mxu0 }
 0x2aa   :  { %v2126_v48 = vadd.f32 %v3498_v44, %v2993_v7  ;;  %v2117_v45 = vpop.f32.mrb[109].mxu0 }
 0x2ab   :  { %v2118_v27 = vadd.f32 %v2993_v7, %v2117_v45  ;;  %v3499_v54 = vpop.f32.mrb[110].mxu0  ;;  %3524 = vmatprep.mubr.bf16.mxu1 %v2152_v25 }
 0x2ac   :  { %v2129_v4 = vadd.f32 %v3499_v54, %v2993_v7  ;;  %v2120_v49 = vpop.f32.mrb[111].mxu0  ;;  %3525 = vmatmul.mubr.bf16.gmra.mrb[104].mxu1 %v2153_v43  ;;  %v2146_v56 = vmax.f32 %v2126_v48, 0.0 }
 0x2ad   :  { %v2121_v52 = vadd.f32 %v2993_v7, %v2120_v49  ;;  %v2144_v12 = vmax.f32 %v2118_v27, 0.0  ;;  %v3854_v7 = vld [vmem:[%s4891_s6 + $0x10] sm:$0xff]  }
 0x2ae   :  { %v2147_v57 = vmax.f32 %v2129_v4, 0.0  ;;  %3568 = vmatprep.subr.bf16.mxu1 %v3854_v7 }
 0x2af   :  { %v2145_v19 = vmax.f32 %v2121_v52, 0.0  ;;  %3569 = vmatpush3.bf16.msra.mxu1 %v3854_v7 }
 0x2b0   :  { %v2155_v58 = vpack.c.bf16 %v2147_v57, %v2146_v56  ;;  %3570 = vmatprep.subr.bf16.mxu1 %v3855_v63 }
 0x2b1   :  { %v2154_v39 = vpack.c.bf16 %v2145_v19, %v2144_v12 }
 0x2b3   :  { %3528 = vmatprep.mubr.bf16.mxu1 %v2154_v39  ;;  %3571 = vmatpush3.bf16.msra.mxu1 %v3855_v63 }
 0x2b4   :  { %3529 = vmatmul.mubr.bf16.gmra.mrb[108].mxu1 %v2155_v58  ;;  %3572 = vmatprep.subr.bf16.mxu1 %v3856_v0 }
 0x2b7   :  { %3573 = vmatpush3.bf16.msra.mxu1 %v3856_v0 }
 0x2b8   :  { %3574 = vmatprep.subr.bf16.mxu1 %v3857_v10 }
 0x2bb   :  { %3575 = vmatpush3.bf16.msra.mxu1 %v3857_v10 }
 0x2bc   :  { %3576 = vmatprep.subr.bf16.mxu1 %v3858_v3 }
 0x2bf   :  { %3577 = vmatpush3.bf16.msra.mxu1 %v3858_v3 }
 0x36f   :  { %v3518_v41 = vpop.f32.mrb[96].mxu1 }
 0x370   :  { %v2254_v6 = vpop.f32.mrb[97].mxu1 }
 0x371   :  { %v3519_v8 = vpop.f32.mrb[98].mxu1 }
 0x372   :  { %v2318_v14 = vpack.c.bf16 %v3519_v8, %v3518_v41  ;;  %v2257_v9 = vpop.f32.mrb[99].mxu1 }
 0x373   :  { %v2317_v15 = vpack.c.bf16 %v2257_v9, %v2254_v6 }
 0x375   :  { %3532 = vmatprep.subr.bf16.mxu0 %v2317_v15 }
 0x376   :  { %3533 = vmatpush3.bf16.msra.mxu0 %v2317_v15 }
 0x377   :  { %v3522_v11 = vpop.f32.mrb[100].mxu1  ;;  %3534 = vmatprep.subr.bf16.mxu0 %v2318_v14 }
 0x378   :  { %v2270_v35 = vpop.f32.mrb[101].mxu1 }
 0x379   :  { %v3523_v23 = vpop.f32.mrb[102].mxu1 }
 0x37a   :  { %v2320_v53 = vpack.c.bf16 %v3523_v23, %v3522_v11  ;;  %v2273_v16 = vpop.f32.mrb[103].mxu1  ;;  %3535 = vmatpush3.bf16.msra.mxu0 %v2318_v14 }
 0x37b   :  { %v2319_v17 = vpack.c.bf16 %v2273_v16, %v2270_v35 }
 0x37d   :  { %3536 = vmatprep.subr.bf16.mxu0 %v2319_v17 }
 0x37e   :  { %3537 = vmatpush3.bf16.msra.mxu0 %v2319_v17 }
 0x37f   :  { %v3526_v18 = vpop.f32.mrb[104].mxu1  ;;  %3538 = vmatprep.subr.bf16.mxu0 %v2320_v53 }
 0x380   :  { %v2286_v29 = vpop.f32.mrb[105].mxu1 }
 0x381   :  { %v3527_v28 = vpop.f32.mrb[106].mxu1 }
 0x382   :  { %v2322_v55 = vpack.c.bf16 %v3527_v28, %v3526_v18  ;;  %v2289_v37 = vpop.f32.mrb[107].mxu1  ;;  %3539 = vmatpush3.bf16.msra.mxu0 %v2320_v53 }
 0x383   :  { %v2321_v20 = vpack.c.bf16 %v2289_v37, %v2286_v29 }
 0x385   :  { %3540 = vmatprep.subr.bf16.mxu0 %v2321_v20 }
 0x386   :  { %3541 = vmatpush3.bf16.msra.mxu0 %v2321_v20 }
 0x387   :  { %v3530_v22 = vpop.f32.mrb[108].mxu1  ;;  %3542 = vmatprep.subr.bf16.mxu0 %v2322_v55 }
 0x388   :  { %v2302_v30 = vpop.f32.mrb[109].mxu1 }
 0x389   :  { %v3531_v13 = vpop.f32.mrb[110].mxu1 }
 0x38a   :  { %v2324_v26 = vpack.c.bf16 %v3531_v13, %v3530_v22  ;;  %v2305_v32 = vpop.f32.mrb[111].mxu1  ;;  %3543 = vmatpush3.bf16.msra.mxu0 %v2322_v55 }
 0x38b   :  { %v2323_v33 = vpack.c.bf16 %v2305_v32, %v2302_v30  ;;  %v3011_v30 = vld [vmem:[%s4893_s7] ss:$0 sm:$0xff] }
 0x38d   :  { %3544 = vmatprep.subr.bf16.mxu0 %v2323_v33 }
 0x38e   :  { %3545 = vmatpush3.bf16.msra.mxu0 %v2323_v33 }
 0x38f   :  { %3546 = vmatprep.subr.bf16.mxu0 %v2324_v26 }
 0x392   :  { %3547 = vmatpush3.bf16.msra.mxu0 %v2324_v26 }
 0x395   :  { %3549 = vmatmul.mubr.bf16.vlgmr.msra.gmra.mrb[112].mxu0 %v4671_v59  ;;  %v3859_v59 = vld [vmem:[%s4891_s6 + $0x38] sm:$0xff]  }
 0x396   :  { %3552 = vmatprep.mubr.bf16.mxu0 %v4676_v24  ;;  %3578 = vmatprep.subr.bf16.mxu1 %v3859_v59  ;;  %v3010_v24 = vld [vmem:[%s4892_s5] ss:$0 sm:$0xff] }
 0x397   :  { %3579 = vmatpush3.bf16.msra.mxu1 %v3859_v59 }
 0x39d   :  { %3553 = vmatmul.mubr.bf16.gmra.mrb[116].mxu0 %v4683_v31 }
 0x39e   :  { %3556 = vmatprep.mubr.bf16.mxu0 %v4688_v60 }
 0x3a5   :  { %3557 = vmatmul.mubr.bf16.gmra.mrb[120].mxu0 %v4695_v1 }
 0x3a6   :  { %3560 = vmatprep.mubr.bf16.mxu0 %v4700_v21 }
 0x3ad   :  { %3561 = vmatmul.mubr.bf16.gmra.mrb[124].mxu0 %v4707_v61 }
 0x468   :  { %v3550_v31 = vpop.f32.mrb[112].mxu0 }
 0x469   :  { %v2375_v60 = vadd.f32 %v3550_v31, %v3010_v24  ;;  %v2366_v1 = vpop.f32.mrb[113].mxu0 }
 0x46a   :  { %v2367_v21 = vadd.f32 %v3010_v24, %v2366_v1  ;;  %v3551_v61 = vpop.f32.mrb[114].mxu0 }
 0x46b   :  { %v2378_v46 = vadd.f32 %v3551_v61, %v3010_v24  ;;  %v2369_v34 = vpop.f32.mrb[115].mxu0  ;;  %v2431_v38 = vmax.f32 %v2375_v60, 0.0 }
 0x46c   :  { %v2370_v36 = vadd.f32 %v3010_v24, %v2369_v34  ;;  %v2429_v50 = vmax.f32 %v2367_v21, 0.0 }
 0x46d   :  { %v2432_v5 = vmax.f32 %v2378_v46, 0.0 }
 0x46e   :  { %v2430_v40 = vmax.f32 %v2370_v36, 0.0 }
 0x46f   :  { %v2446_v42 = vpack.c.bf16 %v2432_v5, %v2431_v38 }
 0x470   :  { %v2445_v47 = vpack.c.bf16 %v2430_v40, %v2429_v50  ;;  %v3554_v51 = vpop.f32.mrb[116].mxu0 }
 0x471   :  { %v2391_v43 = vadd.f32 %v3554_v51, %v3010_v24  ;;  %v2382_v25 = vpop.f32.mrb[117].mxu0 }
 0x472   :  { %v2383_v44 = vadd.f32 %v3010_v24, %v2382_v25  ;;  %v3555_v48 = vpop.f32.mrb[118].mxu0  ;;  %3580 = vmatprep.mubr.bf16.mxu1 %v2445_v47 }
 0x473   :  { %v2435_v45 = vmax.f32 %v2391_v43, 0.0  ;;  %v2394_v27 = vadd.f32 %v3555_v48, %v3010_v24  ;;  %v2385_v54 = vpop.f32.mrb[119].mxu0  ;;  %3581 = vmatmul.mubr.bf16.vlgmr.msra.gmra.mrb[112].mxu1 %v2446_v42 }
 0x474   :  { %v2386_v4 = vadd.f32 %v3010_v24, %v2385_v54  ;;  %v2433_v52 = vmax.f32 %v2383_v44, 0.0 }
 0x475   :  { %v2436_v49 = vmax.f32 %v2394_v27, 0.0 }
 0x476   :  { %v2434_v56 = vmax.f32 %v2386_v4, 0.0 }
 0x477   :  { %v2448_v57 = vpack.c.bf16 %v2436_v49, %v2435_v45 }
 0x478   :  { %v2447_v12 = vpack.c.bf16 %v2434_v56, %v2433_v52  ;;  %v3558_v19 = vpop.f32.mrb[120].mxu0 }
 0x479   :  { %v2407_v58 = vadd.f32 %v3558_v19, %v3010_v24  ;;  %v2398_v39 = vpop.f32.mrb[121].mxu0 }
 0x47a   :  { %v2399_v2 = vadd.f32 %v3010_v24, %v2398_v39  ;;  %v3559_v62 = vpop.f32.mrb[122].mxu0  ;;  %3584 = vmatprep.mubr.bf16.mxu1 %v2447_v12 }
 0x47b   :  { %v2439_v7 = vmax.f32 %v2407_v58, 0.0  ;;  %v2410_v63 = vadd.f32 %v3559_v62, %v3010_v24  ;;  %v2401_v0 = vpop.f32.mrb[123].mxu0  ;;  %3585 = vmatmul.mubr.bf16.gmra.mrb[116].mxu1 %v2448_v57 }
 0x47c   :  { %v2402_v10 = vadd.f32 %v3010_v24, %v2401_v0  ;;  %v2437_v6 = vmax.f32 %v2399_v2, 0.0 }
 0x47d   :  { %v2440_v41 = vmax.f32 %v2410_v63, 0.0 }
 0x47e   :  { %v2438_v8 = vmax.f32 %v2402_v10, 0.0 }
 0x47f   :  { %v2450_v14 = vpack.c.bf16 %v2440_v41, %v2439_v7 }
 0x480   :  { %v2449_v9 = vpack.c.bf16 %v2438_v8, %v2437_v6  ;;  %v3562_v15 = vpop.f32.mrb[124].mxu0 }
 0x481   :  { %v2423_v11 = vadd.f32 %v3562_v15, %v3010_v24  ;;  %v2414_v35 = vpop.f32.mrb[125].mxu0 }
 0x482   :  { %v2415_v23 = vadd.f32 %v3010_v24, %v2414_v35  ;;  %v3563_v53 = vpop.f32.mrb[126].mxu0  ;;  %3588 = vmatprep.mubr.bf16.mxu1 %v2449_v9 }
 0x483   :  { %v2443_v16 = vmax.f32 %v2423_v11, 0.0  ;;  %v2426_v17 = vadd.f32 %v3563_v53, %v3010_v24  ;;  %v2417_v18 = vpop.f32.mrb[127].mxu0  ;;  %3589 = vmatmul.mubr.bf16.gmra.mrb[120].mxu1 %v2450_v14 }
 0x484   :  { %v2418_v29 = vadd.f32 %v3010_v24, %v2417_v18  ;;  %v2441_v55 = vmax.f32 %v2415_v23, 0.0 }
 0x485   :  { %v2444_v28 = vmax.f32 %v2426_v17, 0.0 }
 0x486   :  { %v2442_v37 = vmax.f32 %v2418_v29, 0.0 }
 0x487   :  { %v2452_v20 = vpack.c.bf16 %v2444_v28, %v2443_v16 }
 0x488   :  { %v2451_v22 = vpack.c.bf16 %v2442_v37, %v2441_v55 }
 0x48a   :  { %3592 = vmatprep.mubr.bf16.mxu1 %v2451_v22 }
 0x48b   :  { %3593 = vmatmul.mubr.bf16.gmra.mrb[124].mxu1 %v2452_v20 }
 0x546   :  { %v3582_v13 = vpop.f32.mrb[112].mxu1 }
 0x547   :  { %v2567_v26 = vadd.f32 %v3582_v13, %v3011_v30  ;;  %v2558_v32 = vpop.f32.mrb[113].mxu1 }
 0x548   :  { %v2559_v33 = vadd.f32 %v3011_v30, %v2558_v32  ;;  %v3583_v3 = vpop.f32.mrb[114].mxu1 }
 0x549   :  { %2625 = vmax.xlane.f32.xlu1 %v2567_v26  ;;  %v2561_v59 = vpop.f32.mrb[115].mxu1  ;;  %v2570_v24 = vadd.f32 %v3583_v3, %v3011_v30 }
 0x54a   :  { %2621 = vmax.xlane.f32.xlu0 %v2559_v33  ;;  %v2562_v31 = vadd.f32 %v3011_v30, %v2561_v59 }
 0x54d   :  { %2627 = vmax.xlane.f32.xlu1 %v2570_v24 }
 0x54e   :  { %v3586_v60 = vpop.f32.mrb[116].mxu1  ;;  %2623 = vmax.xlane.f32.xlu0 %v2562_v31 }
 0x54f   :  { %v2583_v1 = vadd.f32 %v3586_v60, %v3011_v30  ;;  %v2574_v21 = vpop.f32.mrb[117].mxu1 }
 0x550   :  { %v3587_v61 = vpop.f32.mrb[118].mxu1  ;;  %v2575_v36 = vadd.f32 %v3011_v30, %v2574_v21 }
 0x551   :  { %v2586_v46 = vadd.f32 %v3587_v61, %v3011_v30  ;;  %v2577_v34 = vpop.f32.mrb[119].mxu1 }
 0x552   :  { %2633 = vmax.xlane.f32.xlu0 %v2583_v1  ;;  %v2578_v38 = vadd.f32 %v3011_v30, %v2577_v34 }
 0x553   :  { %2635 = vmax.xlane.f32.xlu1 %v2586_v46 }
 0x556   :  { %v3590_v5 = vpop.f32.mrb[120].mxu1  ;;  %2629 = vmax.xlane.f32.xlu0 %v2575_v36 }
 0x557   :  { %v2599_v50 = vadd.f32 %v3590_v5, %v3011_v30  ;;  %v2590_v40 = vpop.f32.mrb[121].mxu1  ;;  %2631 = vmax.xlane.f32.xlu1 %v2578_v38 }
 0x558   :  { %v3591_v42 = vpop.f32.mrb[122].mxu1  ;;  %v2591_v43 = vadd.f32 %v3011_v30, %v2590_v40 }
 0x559   :  { %v2602_v47 = vadd.f32 %v3591_v42, %v3011_v30  ;;  %v2593_v51 = vpop.f32.mrb[123].mxu1 }
 0x55a   :  { %2641 = vmax.xlane.f32.xlu0 %v2599_v50  ;;  %v4754_v25 = vadd.f32 %v3011_v30, %v2593_v51 }
 0x55b   :  { %2643 = vmax.xlane.f32.xlu1 %v2602_v47 }
 0x55e   :  { %v3594_v44 = vpop.f32.mrb[124].mxu1  ;;  %2637 = vmax.xlane.f32.xlu0 %v2591_v43 }
 0x55f   :  { %v2606_v48 = vpop.f32.mrb[125].mxu1  ;;  %2639 = vmax.xlane.f32.xlu1 %v4754_v25  ;;  %v4762_v49 = vadd.f32 %v3594_v44, %v3011_v30 }
 0x560   :  { %v4757_v45 = vadd.f32 %v3011_v30, %v2606_v48  ;;  %v3595_v27 = vpop.f32.mrb[126].mxu1 }
 0x561   :  { %v2609_v54 = vpop.f32.mrb[127].mxu1  ;;  %v4765_v52 = vadd.f32 %v3595_v27, %v3011_v30 }
 0x562   :  { %v4759_v4 = vadd.f32 %v3011_v30, %v2609_v54  ;;  %2645 = vmax.xlane.f32.xlu0 %v4757_v45 }
 0x564   :  { %2647 = vmax.xlane.f32.xlu1 %v4759_v4 }
 0x566   :  { %2649 = vmax.xlane.f32.xlu0 %v4762_v49 }
 0x568   :  { %2651 = vmax.xlane.f32.xlu1 %v4765_v52 }
 0x5d6   :  { %v2626_v56 = vpop.xlane.xlu1 %2625 }
 0x5d7   :  { %v4769_v57 = vsub.f32 %v2567_v26, %v2626_v56  ;;  %v2622_v12 = vpop.xlane.xlu0 %2621 }
 0x5d8   :  { %v4771_v19 = vsub.f32 %v2559_v33, %v2622_v12 }
 0x5d9   :  { %v2673_v58 = vmul.f32 1.442695, %v4769_v57 }
 0x5da   :  { %v2669_v39 = vmul.f32 1.442695, %v4771_v19  ;;  %v2628_v2 = vpop.xlane.xlu1 %2627 }
 0x5db   :  { %3860 = vpow2.f32 %v2673_v58  ;;  %v4775_v62 = vsub.f32 %v2570_v24, %v2628_v2  ;;  %v2624_v7 = vpop.xlane.xlu0 %2623 }
 0x5dc   :  { %v4777_v63 = vsub.f32 %v2562_v31, %v2624_v7  ;;  %3862 = vpow2.f32 %v2669_v39 }
 0x5dd   :  { %v2675_v0 = vmul.f32 1.442695, %v4775_v62 }
 0x5de   :  { %v2671_v10 = vmul.f32 1.442695, %v4777_v63 }
 0x5df   :  { %3864 = vpow2.f32 %v2675_v0  ;;  %v2634_v41 = vpop.xlane.xlu0 %2633 }
 0x5e0   :  { %v4781_v6 = vsub.f32 %v2583_v1, %v2634_v41  ;;  %v2636_v8 = vpop.xlane.xlu1 %2635  ;;  %3866 = vpow2.f32 %v2671_v10 }
 0x5e1   :  { %v4783_v14 = vsub.f32 %v2586_v46, %v2636_v8 }
 0x5e2   :  { %v2681_v9 = vmul.f32 1.442695, %v4781_v6 }
 0x5e3   :  { %v2683_v15 = vmul.f32 1.442695, %v4783_v14  ;;  %v2630_v11 = vpop.xlane.xlu0 %2629 }
 0x5e4   :  { %3868 = vpow2.f32 %v2681_v9  ;;  %v4787_v35 = vsub.f32 %v2575_v36, %v2630_v11  ;;  %v2632_v23 = vpop.xlane.xlu1 %2631 }
 0x5e5   :  { %v3861_v53 = vpop.eup %3860  ;;  %v4789_v16 = vsub.f32 %v2578_v38, %v2632_v23  ;;  %3870 = vpow2.f32 %v2683_v15 }
 0x5e6   :  { %v2677_v17 = vmul.f32 1.442695, %v4787_v35  ;;  %2705 = vadd.xlane.f32.xlu0 %v3861_v53  ;;  %v3863_v28 = vpop.eup %3862 }
 0x5e7   :  { %v2679_v18 = vmul.f32 1.442695, %v4789_v16  ;;  %v2642_v29 = vpop.xlane.xlu0 %2641 }
 0x5e8   :  { %3872 = vpow2.f32 %v2677_v17  ;;  %v4793_v55 = vsub.f32 %v2599_v50, %v2642_v29  ;;  %v2644_v37 = vpop.xlane.xlu1 %2643 }
 0x5e9   :  { %v3865_v20 = vpop.eup %3864  ;;  %v4795_v22 = vsub.f32 %v2602_v47, %v2644_v37  ;;  %3874 = vpow2.f32 %v2679_v18 }
 0x5ea   :  { %v2689_v30 = vmul.f32 1.442695, %v4793_v55  ;;  %2707 = vadd.xlane.f32.xlu1 %v3865_v20  ;;  %2701 = vadd.xlane.f32.xlu0 %v3863_v28  ;;  %v3867_v3 = vpop.eup %3866 }
 0x5eb   :  { %v2691_v13 = vmul.f32 1.442695, %v4795_v22  ;;  %v2638_v26 = vpop.xlane.xlu0 %2637 }
 0x5ec   :  { %3876 = vpow2.f32 %v2689_v30  ;;  %v4799_v32 = vsub.f32 %v2591_v43, %v2638_v26  ;;  %v2640_v33 = vpop.xlane.xlu1 %2639 }
 0x5ed   :  { %v4802_v59 = vsub.f32 %v4754_v25, %v2640_v33  ;;  %3878 = vpow2.f32 %v2691_v13 }
 0x5ee   :  { %v3869_v24 = vpop.eup %3868  ;;  %v2685_v31 = vmul.f32 1.442695, %v4799_v32  ;;  %2703 = vadd.xlane.f32.xlu1 %v3867_v3 }
 0x5ef   :  { %v2687_v60 = vmul.f32 1.442695, %v4802_v59  ;;  %2713 = vadd.xlane.f32.xlu0 %v3869_v24  ;;  %v2646_v1 = vpop.xlane.xlu0 %2645  ;;  %v3871_v61 = vpop.eup %3870 }
 0x5f0   :  { %3880 = vpow2.f32 %v2685_v31  ;;  %v4807_v21 = vsub.f32 %v4757_v45, %v2646_v1 }
 0x5f1   :  { %v2648_v46 = vpop.xlane.xlu1 %2647  ;;  %3882 = vpow2.f32 %v2687_v60 }
 0x5f2   :  { %v3873_v34 = vpop.eup %3872  ;;  %v2693_v36 = vmul.f32 1.442695, %v4807_v21  ;;  %v4811_v38 = vsub.f32 %v4759_v4, %v2648_v46  ;;  %2715 = vadd.xlane.f32.xlu1 %v3871_v61 }
 0x5f3   :  { %2709 = vadd.xlane.f32.xlu0 %v3873_v34  ;;  %v2650_v5 = vpop.xlane.xlu0 %2649  ;;  %v3875_v42 = vpop.eup %3874 }
 0x5f4   :  { %3884 = vpow2.f32 %v2693_v36  ;;  %v2695_v50 = vmul.f32 1.442695, %v4811_v38  ;;  %v4815_v40 = vsub.f32 %v4762_v49, %v2650_v5 }
 0x5f5   :  { %v2652_v47 = vpop.xlane.xlu1 %2651 }
 0x5f6   :  { %v3877_v51 = vpop.eup %3876  ;;  %3886 = vpow2.f32 %v2695_v50  ;;  %v2697_v43 = vmul.f32 1.442695, %v4815_v40  ;;  %v4819_v25 = vsub.f32 %v4765_v52, %v2652_v47  ;;  %2711 = vadd.xlane.f32.xlu1 %v3875_v42 }
 0x5f7   :  { %2721 = vadd.xlane.f32.xlu0 %v3877_v51  ;;  %v3879_v48 = vpop.eup %3878 }
 0x5f8   :  { %3888 = vpow2.f32 %v2697_v43  ;;  %v2699_v44 = vmul.f32 1.442695, %v4819_v25 }
 0x5fa   :  { %v3881_v45 = vpop.eup %3880  ;;  %3890 = vpow2.f32 %v2699_v44  ;;  %2723 = vadd.xlane.f32.xlu1 %v3879_v48 }
 0x5fb   :  { %2717 = vadd.xlane.f32.xlu0 %v3881_v45  ;;  %v3883_v27 = vpop.eup %3882 }
 0x5fe   :  { %v3885_v54 = vpop.eup %3884  ;;  %2719 = vadd.xlane.f32.xlu1 %v3883_v27 }
 0x5ff   :  { %2725 = vadd.xlane.f32.xlu0 %v3885_v54 }
 0x600   :  { %v3887_v4 = vpop.eup %3886 }
 0x602   :  { %v3889_v49 = vpop.eup %3888  ;;  %2727 = vadd.xlane.f32.xlu1 %v3887_v4 }
 0x603   :  { %2729 = vadd.xlane.f32.xlu0 %v3889_v49 }
 0x604   :  { %v3891_v52 = vpop.eup %3890 }
 0x606   :  { %2731 = vadd.xlane.f32.xlu1 %v3891_v52 }
 0x673   :  { %v2706_v56 = vpop.xlane.xlu0 %2705 }
 0x674   :  { %3892 = vlog2.f32 %v2706_v56 }
 0x677   :  { %v2708_v12 = vpop.xlane.xlu1 %2707  ;;  %v2702_v58 = vpop.xlane.xlu0 %2701 }
 0x678   :  { %3894 = vlog2.f32 %v2708_v12 }
 0x679   :  { %3896 = vlog2.f32 %v2702_v58 }
 0x67b   :  { %v2704_v39 = vpop.xlane.xlu1 %2703 }
 0x67c   :  { %3898 = vlog2.f32 %v2704_v39  ;;  %v2714_v2 = vpop.xlane.xlu0 %2713 }
 0x67d   :  { %3900 = vlog2.f32 %v2714_v2 }
 0x67e   :  { %v3893_v7 = vpop.eup %3892 }
 0x67f   :  { %v2738_v0 = vmul.f32 0.6931472, %v3893_v7  ;;  %v2716_v10 = vpop.xlane.xlu1 %2715 }
 0x680   :  { %3902 = vlog2.f32 %v2716_v10  ;;  %v2710_v41 = vpop.xlane.xlu0 %2709 }
 0x681   :  { %v2767_v8 = vsub.f32 %v4769_v57, %v2738_v0  ;;  %3904 = vlog2.f32 %v2710_v41 }
 0x682   :  { %v3895_v9 = vpop.eup %3894 }
 0x683   :  { %v3897_v15 = vpop.eup %3896  ;;  %2783 = vst [vmem:[%s4894_s8 + $0x10] sm:$0xff] %v2767_v8  ;;  %v2740_v11 = vmul.f32 0.6931472, %v3895_v9  ;;  %v2712_v23 = vpop.xlane.xlu1 %2711 }
 0x684   :  { %v2734_v53 = vmul.f32 0.6931472, %v3897_v15  ;;  %3906 = vlog2.f32 %v2712_v23  ;;  %v2722_v17 = vpop.xlane.xlu0 %2721 }
 0x685   :  { %v2768_v18 = vsub.f32 %v4775_v62, %v2740_v11  ;;  %3908 = vlog2.f32 %v2722_v17 }
 0x686   :  { %v3899_v29 = vpop.eup %3898  ;;  %v2765_v28 = vsub.f32 %v4771_v19, %v2734_v53 }
 0x687   :  { %v3901_v37 = vpop.eup %3900  ;;  %2784 = vst [vmem:[%s4894_s8 + $0x18] sm:$0xff] %v2768_v18  ;;  %v2736_v57 = vmul.f32 0.6931472, %v3899_v29  ;;  %v2724_v20 = vpop.xlane.xlu1 %2723 }
 0x688   :  { %2781 = vst [vmem:[%s4894_s8] sm:$0xff] %v2765_v28  ;;  %v2746_v30 = vmul.f32 0.6931472, %v3901_v37  ;;  %3910 = vlog2.f32 %v2724_v20  ;;  %v2718_v13 = vpop.xlane.xlu0 %2717 }
 0x689   :  { %v2766_v62 = vsub.f32 %v4777_v63, %v2736_v57  ;;  %3912 = vlog2.f32 %v2718_v13 }
 0x68a   :  { %v3903_v26 = vpop.eup %3902  ;;  %v2771_v19 = vsub.f32 %v4781_v6, %v2746_v30 }
 0x68b   :  { %v3905_v33 = vpop.eup %3904  ;;  %2782 = vst [vmem:[%s4894_s8 + $0x8] sm:$0xff] %v2766_v62  ;;  %v2748_v3 = vmul.f32 0.6931472, %v3903_v26  ;;  %v2720_v24 = vpop.xlane.xlu1 %2719 }
 0x68c   :  { %2787 = vst [vmem:[%s4894_s8 + $0x30] sm:$0xff] %v2771_v19  ;;  %v2742_v31 = vmul.f32 0.6931472, %v3905_v33  ;;  %3914 = vlog2.f32 %v2720_v24  ;;  %v2726_v60 = vpop.xlane.xlu0 %2725 }
 0x68d   :  { %v2772_v63 = vsub.f32 %v4783_v14, %v2748_v3  ;;  %3916 = vlog2.f32 %v2726_v60 }
 0x68e   :  { %v3907_v1 = vpop.eup %3906  ;;  %v2769_v6 = vsub.f32 %v4787_v35, %v2742_v31 }
 0x68f   :  { %v3909_v61 = vpop.eup %3908  ;;  %2788 = vst [vmem:[%s4894_s8 + $0x38] sm:$0xff] %v2772_v63  ;;  %v2744_v46 = vmul.f32 0.6931472, %v3907_v1  ;;  %v2728_v34 = vpop.xlane.xlu1 %2727 }
 0x690   :  { %2785 = vst [vmem:[%s4894_s8 + $0x20] sm:$0xff] %v2769_v6  ;;  %v2754_v36 = vmul.f32 0.6931472, %v3909_v61  ;;  %3918 = vlog2.f32 %v2728_v34  ;;  %v2730_v5 = vpop.xlane.xlu0 %2729 }
 0x691   :  { %v2770_v14 = vsub.f32 %v4789_v16, %v2744_v46  ;;  %3920 = vlog2.f32 %v2730_v5 }
 0x692   :  { %v3911_v50 = vpop.eup %3910  ;;  %v2775_v35 = vsub.f32 %v4793_v55, %v2754_v36 }
 0x693   :  { %v3913_v42 = vpop.eup %3912  ;;  %2786 = vst [vmem:[%s4894_s8 + $0x28] sm:$0xff] %v2770_v14  ;;  %v2756_v47 = vmul.f32 0.6931472, %v3911_v50  ;;  %v2732_v51 = vpop.xlane.xlu1 %2731 }
 0x694   :  { %2791 = vst [vmem:[%s4894_s8 + $0x50] sm:$0xff] %v2775_v35  ;;  %v2750_v43 = vmul.f32 0.6931472, %v3913_v42  ;;  %3922 = vlog2.f32 %v2732_v51 }
 0x695   :  { %v2776_v44 = vsub.f32 %v4795_v22, %v2756_v47 }
 0x696   :  { %v3915_v16 = vpop.eup %3914  ;;  %v2773_v48 = vsub.f32 %v4799_v32, %v2750_v43 }
 0x697   :  { %v3917_v45 = vpop.eup %3916  ;;  %2792 = vst [vmem:[%s4894_s8 + $0x58] sm:$0xff] %v2776_v44  ;;  %v2752_v55 = vmul.f32 0.6931472, %v3915_v16 }
 0x698   :  { %2789 = vst [vmem:[%s4894_s8 + $0x40] sm:$0xff] %v2773_v48  ;;  %v2758_v27 = vmul.f32 0.6931472, %v3917_v45 }
 0x699   :  { %v2774_v54 = vsub.f32 %v4802_v59, %v2752_v55 }
 0x69a   :  { %v3919_v4 = vpop.eup %3918  ;;  %v2777_v49 = vsub.f32 %v4807_v21, %v2758_v27 }
 0x69b   :  { %v3921_v22 = vpop.eup %3920  ;;  %2790 = vst [vmem:[%s4894_s8 + $0x48] sm:$0xff] %v2774_v54  ;;  %v2760_v32 = vmul.f32 0.6931472, %v3919_v4 }
 0x69c   :  { %2793 = vst [vmem:[%s4894_s8 + $0x60] sm:$0xff] %v2777_v49  ;;  %v2762_v52 = vmul.f32 0.6931472, %v3921_v22 }
 0x69d   :  { %v2778_v56 = vsub.f32 %v4811_v38, %v2760_v32 }
 0x69e   :  { %v3923_v12 = vpop.eup %3922  ;;  %v2779_v58 = vsub.f32 %v4815_v40, %v2762_v52 }
 0x69f   :  { %2794 = vst [vmem:[%s4894_s8 + $0x68] sm:$0xff] %v2778_v56  ;;  %v2764_v59 = vmul.f32 0.6931472, %v3923_v12 }
 0x6a0   :  { %2795 = vst [vmem:[%s4894_s8 + $0x70] sm:$0xff] %v2779_v58 }
 0x6a1   :  { %v2780_v21 = vsub.f32 %v4819_v25, %v2764_v59 }
 0x6a3   :  { %2796 = vst [vmem:[%s4894_s8 + $0x78] sm:$0xff] %v2780_v21 }

</bundles_post_ra>
